<compile_context>
chip_gen: v7x
topology: tpu7x:2x2x1
jax: 0.10.0
libtpu: 0.0.40
codegen_flags: <defaults>
</compile_context>

<pallas_src>
import functools

import jax
import jax.numpy as jnp
from jax.experimental import pallas as pl
from jax.experimental.pallas import tpu as pltpu


def _dsconv_kernel(x_ref, w_ref, b_ref, o_ref, *, K, nin_p):
    """One tile of TM spatial positions (lane dim).

    x_ref : (W*nin_p, TM)    VMEM  input slab, positions lane-dense
    w_ref : (nout, K*nin_p)  VMEM  folded (pointwise o depthwise) weights
    b_ref : (nout, 1)        VMEM  folded bias
    o_ref : (Wout, nout, TM) VMEM  output
    """
    Wout = o_ref.shape[0]
    w = w_ref[...]            # (nout, K*nin_p) — tiny, lives in a couple vregs
    b = b_ref[...]            # (nout, 1)

    for wi in range(Wout):    # Wout is small & static -> Python-unrolled
        # Contiguous, 8-aligned sublane block: rows [wi*nin_p, (wi+K)*nin_p).
        xs = x_ref[wi * nin_p:(wi + K) * nin_p, :]
        acc = jnp.dot(w, xs,
                      preferred_element_type=jnp.float32,
                      precision=jax.lax.Precision.HIGHEST)
        o_ref[wi, :, :] = (acc + b).astype(o_ref.dtype)


def _num_tensorcores_per_chip() -> int:
    """Best-effort TensorCore count per device (2 on v7x-style megacore)."""
    try:
        return int(getattr(jax.devices()[0], "num_cores", 1) or 1)
    except Exception:
        return 1


def depthwise_separable_conv(x, w_dw, b_dw, w_pw, b_pw, *, tm=1024):
    """x: (N, nin, H, W) NCHW.  Returns (N, nout, H, W-K+1) NCHW."""
    N, nin, H, W = x.shape
    nout = w_dw.shape[0]
    K = w_dw.shape[-1]
    cm = nout // nin
    Wout = W - K + 1
    M = N * H

    # --- tile-size selection (lane dim = M) --------------------------------
    LANES = 128
    m_blocks = pl.cdiv(M, LANES)
    tm_blocks = max(1, min(tm // LANES, m_blocks))
    ncores = _num_tensorcores_per_chip()
    if ncores > 1 and m_blocks >= 2 * ncores:
        # v7x-style megacore: keep >= 2 grid steps per core so the software
        # pipeline has something to prefetch against on each TensorCore.
        tm_blocks = min(tm_blocks, pl.cdiv(m_blocks, 2 * ncores))
    tm_eff = tm_blocks * LANES
    grid_m = pl.cdiv(m_blocks, tm_blocks)
    M_pad = grid_m * tm_eff

    # --- fold pointwise into depthwise (wrapper-side, tiny tensors) ---------
    nin_p = ((nin + 7) // 8) * 8            # 8-aligned sublane channel pad
    wdw2 = w_dw.reshape(nout, K).astype(jnp.float32)       # (nout, K)
    wpw2 = w_pw.reshape(nout, nout).astype(jnp.float32)    # (c_out, o)
    # depthwise output channel o reads input channel i = o // cm
    wpw_g = wpw2.reshape(nout, nin, cm)     # [c, i, j] = wpw[c, i*cm + j]
    wdw_g = wdw2.reshape(nin, cm, K)        # [i, j, k] = wdw[i*cm + j, k]
    wfold = jnp.einsum('cij,ijk->cki', wpw_g, wdw_g)        # (nout, K, nin)
    if nin_p != nin:
        wfold = jnp.pad(wfold, ((0, 0), (0, 0), (0, nin_p - nin)))
    wcomb = wfold.reshape(nout, K * nin_p)                  # (nout, K*nin_p)
    bcomb = (wpw2 @ b_dw.astype(jnp.float32)
             + b_pw.astype(jnp.float32)).reshape(nout, 1)   # (nout, 1)

    # --- layout glue: one XLA transpose each way ----------------------------
    # (W, nin, N*H): channels on sublanes, positions lane-dense.
    x_lay = jnp.transpose(x, (3, 1, 0, 2)).reshape(W, nin, M)
    pad_c = nin_p - nin
    pad_m = M_pad - M
    if pad_c or pad_m:
        x_lay = jnp.pad(x_lay, ((0, 0), (0, pad_c), (0, pad_m)))
    x2d = x_lay.reshape(W * nin_p, M_pad)                   # (W*nin_p, M_pad)

    out = pl.pallas_call(
        functools.partial(_dsconv_kernel, K=K, nin_p=nin_p),
        out_shape=jax.ShapeDtypeStruct((Wout, nout, M_pad), x.dtype),
        grid_spec=pltpu.PrefetchScalarGridSpec(
            num_scalar_prefetch=0,
            grid=(grid_m,),
            in_specs=[
                pl.BlockSpec((W * nin_p, tm_eff), lambda i: (0, i)),
                pl.BlockSpec((nout, K * nin_p), lambda i: (0, 0)),
                pl.BlockSpec((nout, 1), lambda i: (0, 0)),
            ],
            out_specs=pl.BlockSpec((Wout, nout, tm_eff), lambda i: (0, 0, i)),
        ),
        compiler_params=pltpu.CompilerParams(
            dimension_semantics=("parallel",)),
    )(x2d, wcomb, bcomb)

    # back to NCHW for exact PyTorch parity
    out = out[:, :, :M].reshape(Wout, nout, N, H)
    return jnp.transpose(out, (2, 1, 3, 0))                 # (N, nout, H, Wout)


def _reference(x, w_dw, b_dw, w_pw, b_pw):
    """Pure-JAX reference matching PyTorch semantics."""
    N, nin, H, W = x.shape
    nout = w_dw.shape[0]
    K = w_dw.shape[-1]
    cm = nout // nin
    Wout = W - K + 1
    x_exp = jnp.repeat(x, cm, axis=1)                       # (N, nout, H, W)
    wdw = w_dw.reshape(nout, K)
    dw = jnp.zeros((N, nout, H, Wout), jnp.float32)
    for k in range(K):
        dw = dw + x_exp[:, :, :, k:k + Wout] * wdw[None, :, None, k:k + 1]
    dw = dw + b_dw[None, :, None, None]
    wpw = w_pw.reshape(nout, nout)
    out = jnp.einsum('nohw,co->nchw', dw, wpw) + b_pw[None, :, None, None]
    return out


if __name__ == "__main__":
    configs = [
        # (N, nin, nout, H, W, K)
        (2, 4, 8, 4, 16, 5),      # tiny: single grid step, nin padded 4->8
        (4, 8, 16, 40, 20, 7),    # larger: lane padding, cm=2, nin already 8
    ]
    key = jax.random.PRNGKey(0)
    for (N, nin, nout, H, W, K) in configs:
        key, kx, k1, k2, k3, k4 = jax.random.split(key, 6)

        x = jax.random.normal(kx, (N, nin, H, W), dtype=jnp.float32)
        # depthwise Conv2d(nin, nout, (1, K), groups=nin): weight (nout,1,1,K)
        w_dw = jax.random.normal(k1, (nout, 1, 1, K), dtype=jnp.float32) * 0.1
        b_dw = jax.random.normal(k2, (nout,), dtype=jnp.float32) * 0.1
        # pointwise Conv2d(nout, nout, 1): weight (nout, nout, 1, 1)
        w_pw = jax.random.normal(k3, (nout, nout, 1, 1), dtype=jnp.float32) * 0.1
        b_pw = jax.random.normal(k4, (nout,), dtype=jnp.float32) * 0.1

        out = depthwise_separable_conv(x, w_dw, b_dw, w_pw, b_pw)
        out = jax.block_until_ready(out)

        ref = _reference(x, w_dw, b_dw, w_pw, b_pw)
        assert out.shape == (N, nout, H, W - K + 1), out.shape
        err = float(jnp.max(jnp.abs(out - ref)))
        assert jnp.allclose(out, ref, rtol=1e-5, atol=1e-5), err

    print("KERNEL_OK")
</pallas_src>

<mosaic_0001>
module attributes {stable_mosaic.version = 11 : i64} {
  func.func @_dsconv_kernel(%arg0: i32, %arg1: memref<128x128xf32, #tpu.memory_space<vmem>>, %arg2: memref<8x40xf32, #tpu.memory_space<vmem>>, %arg3: memref<8x1xf32, #tpu.memory_space<vmem>>, %arg4: memref<12x8x128xf32, #tpu.memory_space<vmem>>) attributes {dimension_semantics = [#tpu.dimension_semantics<parallel>], iteration_bounds = array<i64: 1>, scalar_prefetch = 0 : i64, scratch_operands = 0 : i64, tpu.core_type = #tpu.core_type<tc>, window_params = [{transform_indices = @transform_0, window_bounds = array<i64: 128, 128>}, {pipeline_mode = #tpu.pipeline_mode<synchronous>, transform_indices = @transform_1, window_bounds = array<i64: 8, 40>}, {pipeline_mode = #tpu.pipeline_mode<synchronous>, transform_indices = @transform_2, window_bounds = array<i64: 8, 1>}, {transform_indices = @transform_3, window_bounds = array<i64: 12, 8, 128>}]} {
    %c0 = arith.constant 0 : index
    %c0_0 = arith.constant 0 : index
    %0 = vector.load %arg2[%c0, %c0_0] : memref<8x40xf32, #tpu.memory_space<vmem>>, vector<8x40xf32>
    %c0_1 = arith.constant 0 : index
    %c0_2 = arith.constant 0 : index
    %1 = vector.load %arg3[%c0_1, %c0_2] : memref<8x1xf32, #tpu.memory_space<vmem>>, vector<8x1xf32>
    %c0_3 = arith.constant 0 : index
    %c0_4 = arith.constant 0 : index
    %2 = vector.load %arg1[%c0_3, %c0_4] : memref<128x128xf32, #tpu.memory_space<vmem>>, vector<40x128xf32>
    %cst = arith.constant dense<0.000000e+00> : vector<8x128xf32>
    %3 = tpu.matmul %0, %2, %cst {dimension_numbers = #tpu.dot_dimension_numbers<[1], [0], [0], [1], [0, 0, 1, 1], [], []>, precision = #tpu.contract_precision<fp32>} : vector<8x40xf32>, vector<40x128xf32>, vector<8x128xf32> -> vector<8x128xf32>
    %4 = vector.broadcast %1 : vector<8x1xf32> to vector<8x128xf32>
    %5 = arith.addf %3, %4 : vector<8x128xf32>
    %c0_5 = arith.constant 0 : index
    %c0_6 = arith.constant 0 : index
    %c0_7 = arith.constant 0 : index
    %6 = vector.load %arg4[%c0_5, %c0_6, %c0_7] : memref<12x8x128xf32, #tpu.memory_space<vmem>>, vector<1x8x128xf32>
    %7 = vector.shape_cast %6 : vector<1x8x128xf32> to vector<8x128xf32>
    %8 = vector.shape_cast %5 : vector<8x128xf32> to vector<1x8x128xf32>
    tpu.vector_store %arg4[%c0_5, %c0_6, %c0_7], %8 {strides = array<i32>} : memref<12x8x128xf32, #tpu.memory_space<vmem>>, vector<1x8x128xf32>,
    %c8 = arith.constant 8 : index
    %c0_8 = arith.constant 0 : index
    %9 = vector.load %arg1[%c8, %c0_8] : memref<128x128xf32, #tpu.memory_space<vmem>>, vector<40x128xf32>
    %cst_9 = arith.constant dense<0.000000e+00> : vector<8x128xf32>
    %10 = tpu.matmul %0, %9, %cst_9 {dimension_numbers = #tpu.dot_dimension_numbers<[1], [0], [0], [1], [0, 0, 1, 1], [], []>, precision = #tpu.contract_precision<fp32>} : vector<8x40xf32>, vector<40x128xf32>, vector<8x128xf32> -> vector<8x128xf32>
    %11 = vector.broadcast %1 : vector<8x1xf32> to vector<8x128xf32>
    %12 = arith.addf %10, %11 : vector<8x128xf32>
    %c1 = arith.constant 1 : index
    %c0_10 = arith.constant 0 : index
    %c0_11 = arith.constant 0 : index
    %13 = vector.load %arg4[%c1, %c0_10, %c0_11] : memref<12x8x128xf32, #tpu.memory_space<vmem>>, vector<1x8x128xf32>
    %14 = vector.shape_cast %13 : vector<1x8x128xf32> to vector<8x128xf32>
    %15 = vector.shape_cast %12 : vector<8x128xf32> to vector<1x8x128xf32>
    tpu.vector_store %arg4[%c1, %c0_10, %c0_11], %15 {strides = array<i32>} : memref<12x8x128xf32, #tpu.memory_space<vmem>>, vector<1x8x128xf32>,
    %c16 = arith.constant 16 : index
    %c0_12 = arith.constant 0 : index
    %16 = vector.load %arg1[%c16, %c0_12] : memref<128x128xf32, #tpu.memory_space<vmem>>, vector<40x128xf32>
    %cst_13 = arith.constant dense<0.000000e+00> : vector<8x128xf32>
    %17 = tpu.matmul %0, %16, %cst_13 {dimension_numbers = #tpu.dot_dimension_numbers<[1], [0], [0], [1], [0, 0, 1, 1], [], []>, precision = #tpu.contract_precision<fp32>} : vector<8x40xf32>, vector<40x128xf32>, vector<8x128xf32> -> vector<8x128xf32>
    %18 = vector.broadcast %1 : vector<8x1xf32> to vector<8x128xf32>
    %19 = arith.addf %17, %18 : vector<8x128xf32>
    %c2 = arith.constant 2 : index
    %c0_14 = arith.constant 0 : index
    %c0_15 = arith.constant 0 : index
    %20 = vector.load %arg4[%c2, %c0_14, %c0_15] : memref<12x8x128xf32, #tpu.memory_space<vmem>>, vector<1x8x128xf32>
    %21 = vector.shape_cast %20 : vector<1x8x128xf32> to vector<8x128xf32>
    %22 = vector.shape_cast %19 : vector<8x128xf32> to vector<1x8x128xf32>
    tpu.vector_store %arg4[%c2, %c0_14, %c0_15], %22 {strides = array<i32>} : memref<12x8x128xf32, #tpu.memory_space<vmem>>, vector<1x8x128xf32>,
    %c24 = arith.constant 24 : index
    %c0_16 = arith.constant 0 : index
    %23 = vector.load %arg1[%c24, %c0_16] : memref<128x128xf32, #tpu.memory_space<vmem>>, vector<40x128xf32>
    %cst_17 = arith.constant dense<0.000000e+00> : vector<8x128xf32>
    %24 = tpu.matmul %0, %23, %cst_17 {dimension_numbers = #tpu.dot_dimension_numbers<[1], [0], [0], [1], [0, 0, 1, 1], [], []>, precision = #tpu.contract_precision<fp32>} : vector<8x40xf32>, vector<40x128xf32>, vector<8x128xf32> -> vector<8x128xf32>
    %25 = vector.broadcast %1 : vector<8x1xf32> to vector<8x128xf32>
    %26 = arith.addf %24, %25 : vector<8x128xf32>
    %c3 = arith.constant 3 : index
    %c0_18 = arith.constant 0 : index
    %c0_19 = arith.constant 0 : index
    %27 = vector.load %arg4[%c3, %c0_18, %c0_19] : memref<12x8x128xf32, #tpu.memory_space<vmem>>, vector<1x8x128xf32>
    %28 = vector.shape_cast %27 : vector<1x8x128xf32> to vector<8x128xf32>
    %29 = vector.shape_cast %26 : vector<8x128xf32> to vector<1x8x128xf32>
    tpu.vector_store %arg4[%c3, %c0_18, %c0_19], %29 {strides = array<i32>} : memref<12x8x128xf32, #tpu.memory_space<vmem>>, vector<1x8x128xf32>,
    %c32 = arith.constant 32 : index
    %c0_20 = arith.constant 0 : index
    %30 = vector.load %arg1[%c32, %c0_20] : memref<128x128xf32, #tpu.memory_space<vmem>>, vector<40x128xf32>
    %cst_21 = arith.constant dense<0.000000e+00> : vector<8x128xf32>
    %31 = tpu.matmul %0, %30, %cst_21 {dimension_numbers = #tpu.dot_dimension_numbers<[1], [0], [0], [1], [0, 0, 1, 1], [], []>, precision = #tpu.contract_precision<fp32>} : vector<8x40xf32>, vector<40x128xf32>, vector<8x128xf32> -> vector<8x128xf32>
    %32 = vector.broadcast %1 : vector<8x1xf32> to vector<8x128xf32>
    %33 = arith.addf %31, %32 : vector<8x128xf32>
    %c4 = arith.constant 4 : index
    %c0_22 = arith.constant 0 : index
    %c0_23 = arith.constant 0 : index
    %34 = vector.load %arg4[%c4, %c0_22, %c0_23] : memref<12x8x128xf32, #tpu.memory_space<vmem>>, vector<1x8x128xf32>
    %35 = vector.shape_cast %34 : vector<1x8x128xf32> to vector<8x128xf32>
    %36 = vector.shape_cast %33 : vector<8x128xf32> to vector<1x8x128xf32>
    tpu.vector_store %arg4[%c4, %c0_22, %c0_23], %36 {strides = array<i32>} : memref<12x8x128xf32, #tpu.memory_space<vmem>>, vector<1x8x128xf32>,
    %c40 = arith.constant 40 : index
    %c0_24 = arith.constant 0 : index
    %37 = vector.load %arg1[%c40, %c0_24] : memref<128x128xf32, #tpu.memory_space<vmem>>, vector<40x128xf32>
    %cst_25 = arith.constant dense<0.000000e+00> : vector<8x128xf32>
    %38 = tpu.matmul %0, %37, %cst_25 {dimension_numbers = #tpu.dot_dimension_numbers<[1], [0], [0], [1], [0, 0, 1, 1], [], []>, precision = #tpu.contract_precision<fp32>} : vector<8x40xf32>, vector<40x128xf32>, vector<8x128xf32> -> vector<8x128xf32>
    %39 = vector.broadcast %1 : vector<8x1xf32> to vector<8x128xf32>
    %40 = arith.addf %38, %39 : vector<8x128xf32>
    %c5 = arith.constant 5 : index
    %c0_26 = arith.constant 0 : index
    %c0_27 = arith.constant 0 : index
    %41 = vector.load %arg4[%c5, %c0_26, %c0_27] : memref<12x8x128xf32, #tpu.memory_space<vmem>>, vector<1x8x128xf32>
    %42 = vector.shape_cast %41 : vector<1x8x128xf32> to vector<8x128xf32>
    %43 = vector.shape_cast %40 : vector<8x128xf32> to vector<1x8x128xf32>
    tpu.vector_store %arg4[%c5, %c0_26, %c0_27], %43 {strides = array<i32>} : memref<12x8x128xf32, #tpu.memory_space<vmem>>, vector<1x8x128xf32>,
    %c48 = arith.constant 48 : index
    %c0_28 = arith.constant 0 : index
    %44 = vector.load %arg1[%c48, %c0_28] : memref<128x128xf32, #tpu.memory_space<vmem>>, vector<40x128xf32>
    %cst_29 = arith.constant dense<0.000000e+00> : vector<8x128xf32>
    %45 = tpu.matmul %0, %44, %cst_29 {dimension_numbers = #tpu.dot_dimension_numbers<[1], [0], [0], [1], [0, 0, 1, 1], [], []>, precision = #tpu.contract_precision<fp32>} : vector<8x40xf32>, vector<40x128xf32>, vector<8x128xf32> -> vector<8x128xf32>
    %46 = vector.broadcast %1 : vector<8x1xf32> to vector<8x128xf32>
    %47 = arith.addf %45, %46 : vector<8x128xf32>
    %c6 = arith.constant 6 : index
    %c0_30 = arith.constant 0 : index
    %c0_31 = arith.constant 0 : index
    %48 = vector.load %arg4[%c6, %c0_30, %c0_31] : memref<12x8x128xf32, #tpu.memory_space<vmem>>, vector<1x8x128xf32>
    %49 = vector.shape_cast %48 : vector<1x8x128xf32> to vector<8x128xf32>
    %50 = vector.shape_cast %47 : vector<8x128xf32> to vector<1x8x128xf32>
    tpu.vector_store %arg4[%c6, %c0_30, %c0_31], %50 {strides = array<i32>} : memref<12x8x128xf32, #tpu.memory_space<vmem>>, vector<1x8x128xf32>,
    %c56 = arith.constant 56 : index
    %c0_32 = arith.constant 0 : index
    %51 = vector.load %arg1[%c56, %c0_32] : memref<128x128xf32, #tpu.memory_space<vmem>>, vector<40x128xf32>
    %cst_33 = arith.constant dense<0.000000e+00> : vector<8x128xf32>
    %52 = tpu.matmul %0, %51, %cst_33 {dimension_numbers = #tpu.dot_dimension_numbers<[1], [0], [0], [1], [0, 0, 1, 1], [], []>, precision = #tpu.contract_precision<fp32>} : vector<8x40xf32>, vector<40x128xf32>, vector<8x128xf32> -> vector<8x128xf32>
    %53 = vector.broadcast %1 : vector<8x1xf32> to vector<8x128xf32>
    %54 = arith.addf %52, %53 : vector<8x128xf32>
    %c7 = arith.constant 7 : index
    %c0_34 = arith.constant 0 : index
    %c0_35 = arith.constant 0 : index
    %55 = vector.load %arg4[%c7, %c0_34, %c0_35] : memref<12x8x128xf32, #tpu.memory_space<vmem>>, vector<1x8x128xf32>
    %56 = vector.shape_cast %55 : vector<1x8x128xf32> to vector<8x128xf32>
    %57 = vector.shape_cast %54 : vector<8x128xf32> to vector<1x8x128xf32>
    tpu.vector_store %arg4[%c7, %c0_34, %c0_35], %57 {strides = array<i32>} : memref<12x8x128xf32, #tpu.memory_space<vmem>>, vector<1x8x128xf32>,
    %c64 = arith.constant 64 : index
    %c0_36 = arith.constant 0 : index
    %58 = vector.load %arg1[%c64, %c0_36] : memref<128x128xf32, #tpu.memory_space<vmem>>, vector<40x128xf32>
    %cst_37 = arith.constant dense<0.000000e+00> : vector<8x128xf32>
    %59 = tpu.matmul %0, %58, %cst_37 {dimension_numbers = #tpu.dot_dimension_numbers<[1], [0], [0], [1], [0, 0, 1, 1], [], []>, precision = #tpu.contract_precision<fp32>} : vector<8x40xf32>, vector<40x128xf32>, vector<8x128xf32> -> vector<8x128xf32>
    %60 = vector.broadcast %1 : vector<8x1xf32> to vector<8x128xf32>
    %61 = arith.addf %59, %60 : vector<8x128xf32>
    %c8_38 = arith.constant 8 : index
    %c0_39 = arith.constant 0 : index
    %c0_40 = arith.constant 0 : index
    %62 = vector.load %arg4[%c8_38, %c0_39, %c0_40] : memref<12x8x128xf32, #tpu.memory_space<vmem>>, vector<1x8x128xf32>
    %63 = vector.shape_cast %62 : vector<1x8x128xf32> to vector<8x128xf32>
    %64 = vector.shape_cast %61 : vector<8x128xf32> to vector<1x8x128xf32>
    tpu.vector_store %arg4[%c8_38, %c0_39, %c0_40], %64 {strides = array<i32>} : memref<12x8x128xf32, #tpu.memory_space<vmem>>, vector<1x8x128xf32>,
    %c72 = arith.constant 72 : index
    %c0_41 = arith.constant 0 : index
    %65 = vector.load %arg1[%c72, %c0_41] : memref<128x128xf32, #tpu.memory_space<vmem>>, vector<40x128xf32>
    %cst_42 = arith.constant dense<0.000000e+00> : vector<8x128xf32>
    %66 = tpu.matmul %0, %65, %cst_42 {dimension_numbers = #tpu.dot_dimension_numbers<[1], [0], [0], [1], [0, 0, 1, 1], [], []>, precision = #tpu.contract_precision<fp32>} : vector<8x40xf32>, vector<40x128xf32>, vector<8x128xf32> -> vector<8x128xf32>
    %67 = vector.broadcast %1 : vector<8x1xf32> to vector<8x128xf32>
    %68 = arith.addf %66, %67 : vector<8x128xf32>
    %c9 = arith.constant 9 : index
    %c0_43 = arith.constant 0 : index
    %c0_44 = arith.constant 0 : index
    %69 = vector.load %arg4[%c9, %c0_43, %c0_44] : memref<12x8x128xf32, #tpu.memory_space<vmem>>, vector<1x8x128xf32>
    %70 = vector.shape_cast %69 : vector<1x8x128xf32> to vector<8x128xf32>
    %71 = vector.shape_cast %68 : vector<8x128xf32> to vector<1x8x128xf32>
    tpu.vector_store %arg4[%c9, %c0_43, %c0_44], %71 {strides = array<i32>} : memref<12x8x128xf32, #tpu.memory_space<vmem>>, vector<1x8x128xf32>,
    %c80 = arith.constant 80 : index
    %c0_45 = arith.constant 0 : index
    %72 = vector.load %arg1[%c80, %c0_45] : memref<128x128xf32, #tpu.memory_space<vmem>>, vector<40x128xf32>
    %cst_46 = arith.constant dense<0.000000e+00> : vector<8x128xf32>
    %73 = tpu.matmul %0, %72, %cst_46 {dimension_numbers = #tpu.dot_dimension_numbers<[1], [0], [0], [1], [0, 0, 1, 1], [], []>, precision = #tpu.contract_precision<fp32>} : vector<8x40xf32>, vector<40x128xf32>, vector<8x128xf32> -> vector<8x128xf32>
    %74 = vector.broadcast %1 : vector<8x1xf32> to vector<8x128xf32>
    %75 = arith.addf %73, %74 : vector<8x128xf32>
    %c10 = arith.constant 10 : index
    %c0_47 = arith.constant 0 : index
    %c0_48 = arith.constant 0 : index
    %76 = vector.load %arg4[%c10, %c0_47, %c0_48] : memref<12x8x128xf32, #tpu.memory_space<vmem>>, vector<1x8x128xf32>
    %77 = vector.shape_cast %76 : vector<1x8x128xf32> to vector<8x128xf32>
    %78 = vector.shape_cast %75 : vector<8x128xf32> to vector<1x8x128xf32>
    tpu.vector_store %arg4[%c10, %c0_47, %c0_48], %78 {strides = array<i32>} : memref<12x8x128xf32, #tpu.memory_space<vmem>>, vector<1x8x128xf32>,
    %c88 = arith.constant 88 : index
    %c0_49 = arith.constant 0 : index
    %79 = vector.load %arg1[%c88, %c0_49] : memref<128x128xf32, #tpu.memory_space<vmem>>, vector<40x128xf32>
    %cst_50 = arith.constant dense<0.000000e+00> : vector<8x128xf32>
    %80 = tpu.matmul %0, %79, %cst_50 {dimension_numbers = #tpu.dot_dimension_numbers<[1], [0], [0], [1], [0, 0, 1, 1], [], []>, precision = #tpu.contract_precision<fp32>} : vector<8x40xf32>, vector<40x128xf32>, vector<8x128xf32> -> vector<8x128xf32>
    %81 = vector.broadcast %1 : vector<8x1xf32> to vector<8x128xf32>
    %82 = arith.addf %80, %81 : vector<8x128xf32>
    %c11 = arith.constant 11 : index
    %c0_51 = arith.constant 0 : index
    %c0_52 = arith.constant 0 : index
    %83 = vector.load %arg4[%c11, %c0_51, %c0_52] : memref<12x8x128xf32, #tpu.memory_space<vmem>>, vector<1x8x128xf32>
    %84 = vector.shape_cast %83 : vector<1x8x128xf32> to vector<8x128xf32>
    %85 = vector.shape_cast %82 : vector<8x128xf32> to vector<1x8x128xf32>
    tpu.vector_store %arg4[%c11, %c0_51, %c0_52], %85 {strides = array<i32>} : memref<12x8x128xf32, #tpu.memory_space<vmem>>, vector<1x8x128xf32>,
    return
  }
  func.func @transform_0(%arg0: i32) -> (i32, i32) {
    %c0_i32 = arith.constant 0 : i32
    %c0_i32_0 = arith.constant 0 : i32
    return %c0_i32, %arg0 : i32, i32
  }
  func.func @transform_1(%arg0: i32) -> (i32, i32) {
    %c0_i32 = arith.constant 0 : i32
    %c0_i32_0 = arith.constant 0 : i32
    %c0_i32_1 = arith.constant 0 : i32
    return %c0_i32, %c0_i32_0 : i32, i32
  }
  func.func @transform_2(%arg0: i32) -> (i32, i32) {
    %c0_i32 = arith.constant 0 : i32
    %c0_i32_0 = arith.constant 0 : i32
    %c0_i32_1 = arith.constant 0 : i32
    return %c0_i32, %c0_i32_0 : i32, i32
  }
  func.func @transform_3(%arg0: i32) -> (i32, i32, i32) {
    %c0_i32 = arith.constant 0 : i32
    %c0_i32_0 = arith.constant 0 : i32
    %c0_i32_1 = arith.constant 0 : i32
    return %c0_i32, %c0_i32_0, %arg0 : i32, i32, i32
  }
}

</mosaic_0001>

<bundles_post_ra>
// kernel: tpu_custom_call.1
= control target key start
LH: loop header
LB: loop body
LE: loop exit
PB: predicated region body
PF: predicated region fallthrough
CT: control target
= control target key end

     0   :  { %8 = vsyncpa [#allocation3], 0  ;;  %s9177_s0 = inlined_call_operand.hbm [shape: f32[128,128], index: 0, kind: input, shape index: {}]   ;;  %s9178_s1 = inlined_call_operand.vmem [shape: f32[8,40], index: 1, kind: input, shape index: {}]   ;;  %s9179_s2 = inlined_call_operand.vmem [shape: f32[8,1], index: 2, kind: input, shape index: {}]   ;;  %s9180_s3 = inlined_call_operand.hbm [shape: f32[12,8,128], index: 3, kind: output, shape index: {}]  }
   0x1   :  { %9 = vsyncpa [#allocation4], 0  ;;  %s8105_s12 = smov [#allocation2]   ;;  %s8057_s16 = scalar_lea.hbm %s9177_s0, 2048 }
   0x2   :  { %s15_s13 = sshll.u32 %s8105_s12, 4  ;;  %p8058_p0 = scmp.ne.s32.totalorder %s9177_s0, %s8057_s16  ;;  %s16_s13 = int_to_ptr.vmem [resolvable:$true] %s15_s13 }
   0x3   :  { %p8061_p1 = scmp.lt.u32.totalorder %s8057_s16, %s9177_s0 }
   0x5   :  { %p8063_p2 = pnand %p8061_p1, %p8058_p0 }
   0x7   :  { %8066 = shalt.err (!%p8063_p2)
}
   0x8   :  { %s8067_s21 = scalar_lea.vmem %s16_s13, 2048  ;;  %p8072_p4 = scmp.lt.s32.totalorder %s16_s13, %s16_s13 }
   0x9   :  { %p8068_p3 = scmp.ne.s32.totalorder %s16_s13, %s8067_s21  ;;  %p8073_p5 = scmp.lt.s32.totalorder %s8067_s21, %s8067_s21 }
   0xb   :  { %p8074_p6 = por %p8073_p5, %p8072_p4 }
   0xd   :  { %p8075_p7 = pnand %p8074_p6, %p8068_p3 }
   0xf   :  { %8078 = shalt.err (!%p8075_p7)
}
  0x10   :  { %s8106_s22 = smov 128   ;;  %s8107_s23 = smov 8  }
  0x11   :  { %21 = dma.hbm_to_vmem [thread:$0]  %s9177_s0, 2048, %s16_s13, [#allocation3], %s8106_s22, %s8106_s22, %s8107_s23  }
  0x12   :  { %8101 = dma.done.wait [#allocation3], 2048  }
  0x13   :  { %8102 = vsyncadd [#allocation3], 4294965248  ;;  %v8108_v0 = vmov 0.0|0.0   ;;  %vm8109_vm0 = vmmov 0   ;;  %v8110_v1 = vmov 0.0   ;;  %v31_v2 = vld [vmem:[#allocation2] sm:$0xff] }
  0x14   :  { %7484 = vmatprep.subr.bf16.mxu0 %v8108_v0  ;;  %7520 = vmatprep.subr.bf16.mxu1 %v8108_v0  ;;  %v32_v3 = vld [vmem:[#allocation2 + $0x8] sm:$0xff]  ;;  %v545_v4 = vld [vmem:[#allocation2 + $0x10] sm:$0xff]  ;;  %v46_v5 = vand.u32 4294901760, %v31_v2  ;;  %v34_v8 = vld [vmem:[#allocation2 + $0x18] sm:$0xff]  ;;  %vm41_vm1 = vcmask 326656   ;;  %v8111_v61 = vmov 0  }
  0x15   :  { %6558 = vmatprep.mubr.msk.f32.mxu0 %vm8109_vm0, %v8110_v1  ;;  %6636 = vmatprep.mubr.msk.f32.mxu1 %vm8109_vm0, %v8110_v1  ;;  %v49_v6 = vand.u32 4294901760, %v32_v3  ;;  %v553_v7 = vand.u32 4294901760, %v545_v4  ;;  %v547_v9 = vld [vmem:[#allocation2 + $0x20] sm:$0xff]  ;;  %v548_v10 = vld [vmem:[#allocation2 + $0x28] sm:$0xff]  ;;  %v55_v11 = vand.u32 4294901760, %v34_v8 }
  0x16   :  { %v8154_v12 = vand.u32 4294901760, %v547_v9  ;;  %v8156_v13 = vand.u32 4294901760, %v548_v10  ;;  %v29_v14 = vld [vmem:[%s9178_s1] sm:$0xff]  ;;  %v8163_v16 = vsub.f32 %v31_v2, %v46_v5  ;;  %8056 = vset.pattern.permute.xlu0 %v8111_v61 }
  0x17   :  { %v8161_v15 = vpack.c.bf16 %v49_v6, %v46_v5  ;;  %v8165_v17 = vsub.f32 %v32_v3, %v49_v6  ;;  %v8167_v18 = vpack.c.bf16 %v553_v7, %v49_v6  ;;  %v8169_v19 = vsub.f32 %v545_v4, %v553_v7  ;;  %v30_v60 = vld [vmem:[%s9179_s2] sm:$0xff]  ;;  %v1557_v4 = vld [vmem:[#allocation2 + $0x30] sm:$0xff]  ;;  %s8112_s2 = smov [#allocation5]  }
  0x18   :  { %v8171_v20 = vpack.c.bf16 %v55_v11, %v553_v7  ;;  %v8173_v21 = vsub.f32 %v34_v8, %v55_v11  ;;  %v8176_v22 = vpack.c.bf16 %v8154_v12, %v55_v11  ;;  %v8181_v23 = vsub.f32 %v547_v9, %v8154_v12  ;;  %38 = vperm.xlu0 %8056, %v30_v60   ;;  %v1558_v7 = vld [vmem:[#allocation2 + $0x38] sm:$0xff]  ;;  %s6104_s28 = sshll.u32 %s8112_s2, 4  ;;  %s6105_s28 = int_to_ptr.vmem [resolvable:$true] %s6104_s28 }
  0x19   :  { %7486 = vmatpush3.bf16.msra.mxu0 %v8161_v15  ;;  %7522 = vmatpush3.bf16.msra.mxu1 %v8167_v18  ;;  %v8184_v24 = vsub.f32 %v548_v10, %v8156_v13  ;;  %v43_v25 = vsel %vm41_vm1, %v29_v14, 0  ;;  %v128_v26 = vand.u32 4294901760, %v8163_v16  ;;  %v8192_v28 = vand.u32 4294901760, %v8165_v17  ;;  %s8079_s29 = scalar_lea.vmem %s6105_s28, 1536  ;;  %p8084_p9 = scmp.lt.s32.totalorder %s6105_s28, %s6105_s28 }
  0x1a   :  { %7487 = vmatprep.subr.bf16.mxu0 %v8108_v0  ;;  %7523 = vmatprep.subr.bf16.mxu1 %v8108_v0  ;;  %v8189_v27 = vand.u32 4294901760, %v43_v25  ;;  %v8195_v29 = vand.u32 4294901760, %v8169_v19  ;;  %v8198_v30 = vand.u32 4294901760, %v8173_v21  ;;  %v8204_v32 = vand.u32 4294901760, %v8181_v23  ;;  %p8080_p8 = scmp.ne.s32.totalorder %s6105_s28, %s8079_s29  ;;  %p8085_p10 = scmp.lt.s32.totalorder %s8079_s29, %s8079_s29 }
  0x1b   :  { %v129_v31 = vsub.f32 %v8163_v16, %v128_v26  ;;  %v136_v34 = vsub.f32 %v8165_v17, %v8192_v28  ;;  %v8214_v36 = vand.u32 4294901760, %v8184_v24  ;;  %v8243_v51 = vpack.c.bf16 %v8184_v24, %v8181_v23 }
  0x1c   :  { %v8207_v33 = vsub.f32 %v43_v25, %v8189_v27  ;;  %v640_v35 = vsub.f32 %v8169_v19, %v8195_v29  ;;  %v150_v38 = vsub.f32 %v8173_v21, %v8198_v30  ;;  %v654_v39 = vsub.f32 %v8181_v23, %v8204_v32  ;;  %p8086_p11 = por %p8085_p10, %p8084_p9 }
  0x1d   :  { %7489 = vmatpush3.bf16.msra.mxu0 %v8171_v20  ;;  %7525 = vmatpush3.bf16.msra.mxu1 %v8176_v22  ;;  %v130_v37 = vand.u32 4294901760, %v129_v31  ;;  %v137_v41 = vand.u32 4294901760, %v136_v34  ;;  %v661_v44 = vsub.f32 %v8184_v24, %v8214_v36  ;;  %v8247_v52 = vpack.c.bf16 %v8214_v36, %v8204_v32 }
  0x1e   :  { %6556 = vmatprep.subr.mxu0 %v8110_v1  ;;  %6634 = vmatprep.subr.mxu1 %v8110_v1  ;;  %v8225_v40 = vand.u32 4294901760, %v8207_v33  ;;  %v641_v42 = vand.u32 4294901760, %v640_v35  ;;  %v151_v47 = vand.u32 4294901760, %v150_v38  ;;  %v655_v48 = vand.u32 4294901760, %v654_v39  ;;  %p8087_p12 = pnand %p8086_p11, %p8080_p8 }
  0x1f   :  { %v7491_v45 = vpack.c.bf16 %v137_v41, %v130_v37  ;;  %v8239_v50 = vand.u32 4294901760, %v661_v44  ;;  %v7497_v56 = vpack.c.bf16 %v8165_v17, %v8163_v16  ;;  %v7533_v57 = vpack.c.bf16 %v8169_v19, %v8165_v17  ;;  %v3577_v44 = vld [vmem:[#allocation2 + $0x50] sm:$0xff] }
  0x20   :  { %v118_v43 = vsub.f32 %v8207_v33, %v8225_v40  ;;  %v7527_v46 = vpack.c.bf16 %v641_v42, %v137_v41  ;;  %v8249_v53 = vpack.c.bf16 %v151_v47, %v641_v42  ;;  %v8251_v54 = vpack.c.bf16 %v655_v48, %v151_v47  ;;  %v3578_v47 = vld [vmem:[#allocation2 + $0x58] sm:$0xff] }
  0x21   :  { %6557 = vmatpush3.msra.mxu0 %v8154_v12  ;;  %6635 = vmatpush3.msra.mxu1 %v8156_v13  ;;  %v8256_v55 = vpack.c.bf16 %v8239_v50, %v655_v48  ;;  %v8277_v58 = vpack.c.bf16 %v8173_v21, %v8169_v19  ;;  %v8281_v59 = vpack.c.bf16 %v8181_v23, %v8173_v21  ;;  %v8359_v5 = vand.u32 4294901760, %v1557_v4 }
  0x22   :  { %7490 = vmatprep.subr.bf16.mxu0 %v8108_v0  ;;  %7526 = vmatprep.subr.bf16.mxu1 %v8108_v0  ;;  %v8235_v49 = vand.u32 4294901760, %v118_v43  ;;  %v7509_v62 = vpack.c.bf16 %v8192_v28, %v128_v26  ;;  %v7545_v63 = vpack.c.bf16 %v8195_v29, %v8192_v28  ;;  %v8327_v2 = vpack.c.bf16 %v8198_v30, %v8195_v29 }
  0x23   :  { %v8331_v3 = vpack.c.bf16 %v8204_v32, %v8198_v30  ;;  %v8364_v6 = vsub.f32 %v1557_v4, %v8359_v5  ;;  %v8379_v9 = vpack.c.bf16 %v8156_v13, %v8154_v12  ;;  %v8383_v10 = vpack.c.bf16 %v8359_v5, %v8156_v13 }
  0x24   :  { %6559 = vmatmul.mubr.f32.vlgmr.msra.gmra.mrb[0].mxu0 %v8235_v49  ;;  %6637 = vmatmul.mubr.f32.vlgmr.msra.gmra.mrb[0].mxu1 %v8235_v49  ;;  %v8387_v11 = vand.u32 4294901760, %v1558_v7 }
  0x25   :  { %7492 = vmatpush3.bf16.msra.mxu0 %v7491_v45  ;;  %7528 = vmatpush3.bf16.msra.mxu1 %v7527_v46  ;;  %v8373_v8 = vand.u32 4294901760, %v8364_v6  ;;  %v8443_v19 = vpack.c.bf16 %v8364_v6, %v8184_v24  ;;  %v8675_v45 = vand.u32 4294901760, %v3577_v44 }
  0x26   :  { %7493 = vmatprep.subr.bf16.mxu0 %v8108_v0  ;;  %7529 = vmatprep.subr.bf16.mxu1 %v8108_v0  ;;  %v8394_v14 = vsub.f32 %v1558_v7, %v8387_v11  ;;  %v8531_v26 = vpack.c.bf16 %v8387_v11, %v8359_v5 }
  0x27   :  { %6571 = vmatprep.mubr.msk.f32.mxu0 %vm8109_vm0, %v8110_v1  ;;  %6649 = vmatprep.mubr.msk.f32.mxu1 %vm8109_vm0, %v8110_v1  ;;  %v8483_v21 = vpack.c.bf16 %v8373_v8, %v8214_v36  ;;  %v8680_v46 = vsub.f32 %v3577_v44, %v8675_v45 }
  0x28   :  { %v8599_v39 = vpack.c.bf16 %v8394_v14, %v8364_v6 }
  0x29   :  { %7495 = vmatpush3.bf16.msra.mxu0 %v8249_v53  ;;  %7531 = vmatpush3.bf16.msra.mxu1 %v8251_v54 }
  0x2a   :  { %6569 = vmatprep.subr.mxu0 %v8110_v1  ;;  %6647 = vmatprep.subr.mxu1 %v8110_v1 }
  0x2d   :  { %6570 = vmatpush3.msra.mxu0 %v655_v48  ;;  %6648 = vmatpush3.msra.mxu1 %v8239_v50  ;;  %v8689_v48 = vand.u32 4294901760, %v8680_v46 }
  0x2e   :  { %7496 = vmatprep.subr.bf16.mxu0 %v8108_v0  ;;  %7532 = vmatprep.subr.bf16.mxu1 %v8108_v0 }
  0x2f   :  { %6572 = vmatmul.mubr.f32.vlgmr.msra.gmra.mrb[0].mxu0 %v8189_v27  ;;  %6650 = vmatmul.mubr.f32.vlgmr.msra.gmra.mrb[0].mxu1 %v8189_v27 }
  0x30   :  { %7498 = vmatpush3.bf16.msra.mxu0 %v7497_v56  ;;  %7534 = vmatpush3.bf16.msra.mxu1 %v7533_v57 }
  0x31   :  { %7499 = vmatprep.subr.bf16.mxu0 %v8108_v0  ;;  %7535 = vmatprep.subr.bf16.mxu1 %v8108_v0 }
  0x32   :  { %6584 = vmatprep.mubr.msk.f32.mxu0 %vm8109_vm0, %v8110_v1  ;;  %6662 = vmatprep.mubr.msk.f32.mxu1 %vm8109_vm0, %v8110_v1 }
  0x34   :  { %7501 = vmatpush3.bf16.msra.mxu0 %v8277_v58  ;;  %7537 = vmatpush3.bf16.msra.mxu1 %v8281_v59 }
  0x35   :  { %6582 = vmatprep.subr.mxu0 %v8110_v1  ;;  %6660 = vmatprep.subr.mxu1 %v8110_v1 }
  0x38   :  { %6583 = vmatpush3.msra.mxu0 %v8181_v23  ;;  %6661 = vmatpush3.msra.mxu1 %v8184_v24  ;;  %v2567_v23 = vld [vmem:[#allocation2 + $0x40] sm:$0xff] }
  0x39   :  { %7502 = vmatprep.subr.bf16.mxu0 %v8108_v0  ;;  %7538 = vmatprep.subr.bf16.mxu1 %v8108_v0  ;;  %v8511_v24 = vand.u32 4294901760, %v2567_v23 }
  0x3a   :  { %6585 = vmatmul.mubr.f32.vlgmr.msra.gmra.mrb[0].mxu0 %v8207_v33  ;;  %6663 = vmatmul.mubr.f32.vlgmr.msra.gmra.mrb[0].mxu1 %v8207_v33 }
  0x3b   :  { %7504 = vmatpush3.bf16.msra.mxu0 %v8161_v15  ;;  %7540 = vmatpush3.bf16.msra.mxu1 %v8167_v18  ;;  %v8535_v28 = vpack.c.bf16 %v8511_v24, %v8387_v11 }
  0x3c   :  { %7505 = vmatprep.subr.bf16.mxu0 %v8108_v0  ;;  %7541 = vmatprep.subr.bf16.mxu1 %v8108_v0 }
  0x3d   :  { %6597 = vmatprep.mubr.msk.f32.mxu0 %vm8109_vm0, %v8110_v1  ;;  %6675 = vmatprep.mubr.msk.f32.mxu1 %vm8109_vm0, %v8110_v1 }
  0x3f   :  { %7507 = vmatpush3.bf16.msra.mxu0 %v8171_v20  ;;  %7543 = vmatpush3.bf16.msra.mxu1 %v8176_v22 }
  0x40   :  { %6595 = vmatprep.subr.mxu0 %v8110_v1  ;;  %6673 = vmatprep.subr.mxu1 %v8110_v1 }
  0x43   :  { %6596 = vmatpush3.msra.mxu0 %v8154_v12  ;;  %6674 = vmatpush3.msra.mxu1 %v8156_v13 }
  0x44   :  { %7508 = vmatprep.subr.bf16.mxu0 %v8108_v0  ;;  %7544 = vmatprep.subr.bf16.mxu1 %v8108_v0 }
  0x45   :  { %6598 = vmatmul.mubr.f32.vlgmr.msra.gmra.mrb[0].mxu0 %v8225_v40  ;;  %6676 = vmatmul.mubr.f32.vlgmr.msra.gmra.mrb[0].mxu1 %v8225_v40 }
  0x46   :  { %7510 = vmatpush3.bf16.msra.mxu0 %v7509_v62  ;;  %7546 = vmatpush3.bf16.msra.mxu1 %v7545_v63 }
  0x47   :  { %7511 = vmatprep.subr.bf16.mxu0 %v8108_v0  ;;  %7547 = vmatprep.subr.bf16.mxu1 %v8108_v0 }
  0x48   :  { %6610 = vmatprep.mubr.msk.f32.mxu0 %vm8109_vm0, %v8110_v1  ;;  %6688 = vmatprep.mubr.msk.f32.mxu1 %vm8109_vm0, %v8110_v1 }
  0x4a   :  { %7513 = vmatpush3.bf16.msra.mxu0 %v8327_v2  ;;  %7549 = vmatpush3.bf16.msra.mxu1 %v8331_v3 }
  0x4b   :  { %6608 = vmatprep.subr.mxu0 %v8110_v1  ;;  %6686 = vmatprep.subr.mxu1 %v8110_v1 }
  0x4e   :  { %6609 = vmatpush3.msra.mxu0 %v8204_v32  ;;  %6687 = vmatpush3.msra.mxu1 %v8214_v36 }
  0x4f   :  { %7514 = vmatprep.subr.bf16.mxu0 %v8108_v0  ;;  %7550 = vmatprep.subr.bf16.mxu1 %v8108_v0 }
  0x50   :  { %6611 = vmatmul.mubr.f32.vlgmr.msra.gmra.mrb[0].mxu0 %v8189_v27  ;;  %6689 = vmatmul.mubr.f32.vlgmr.msra.gmra.mrb[0].mxu1 %v8189_v27 }
  0x51   :  { %7516 = vmatpush3.bf16.msra.mxu0 %v8161_v15  ;;  %7552 = vmatpush3.bf16.msra.mxu1 %v8167_v18  ;;  %v8405_v15 = vand.u32 4294901760, %v8394_v14 }
  0x52   :  { %7517 = vmatprep.subr.bf16.mxu0 %v8108_v0  ;;  %7553 = vmatprep.subr.bf16.mxu1 %v8108_v0 }
  0x53   :  { %6623 = vmatprep.mubr.msk.f32.mxu0 %vm8109_vm0, %v8110_v1  ;;  %6701 = vmatprep.mubr.msk.f32.mxu1 %vm8109_vm0, %v8110_v1  ;;  %v1671_v17 = vsub.f32 %v8394_v14, %v8405_v15  ;;  %v8643_v42 = vpack.c.bf16 %v8405_v15, %v8373_v8 }
  0x55   :  { %7519 = vmatpush3.bf16.msra.mxu0 %v8171_v20  ;;  %7555 = vmatpush3.bf16.msra.mxu1 %v8176_v22  ;;  %v8429_v18 = vand.u32 4294901760, %v1671_v17 }
  0x56   :  { %6621 = vmatprep.subr.mxu0 %v8110_v1  ;;  %6699 = vmatprep.subr.mxu1 %v8110_v1 }
  0x59   :  { %6622 = vmatpush3.msra.mxu0 %v8154_v12  ;;  %6700 = vmatpush3.msra.mxu1 %v8156_v13  ;;  %v1664_v12 = vsub.f32 %v8364_v6, %v8373_v8 }
  0x5a   :  { %6624 = vmatmul.mubr.f32.vlgmr.msra.gmra.mrb[0].mxu0 %v8189_v27  ;;  %6702 = vmatmul.mubr.f32.vlgmr.msra.gmra.mrb[0].mxu1 %v8189_v27 }
  0x5b   :  { %7556 = vmatprep.subr.bf16.mxu0 %v8108_v0  ;;  %7592 = vmatprep.subr.bf16.mxu1 %v8108_v0  ;;  %v8402_v13 = vand.u32 4294901760, %v1664_v12 }
  0x5c   :  { %7558 = vmatpush3.bf16.msra.mxu0 %v8171_v20  ;;  %7594 = vmatpush3.bf16.msra.mxu1 %v8176_v22 }
  0x5d   :  { %7559 = vmatprep.subr.bf16.mxu0 %v8108_v0  ;;  %7595 = vmatprep.subr.bf16.mxu1 %v8108_v0  ;;  %v8417_v16 = vpack.c.bf16 %v8402_v13, %v8239_v50  ;;  %v8569_v35 = vpack.c.bf16 %v8429_v18, %v8402_v13 }
  0x5e   :  { %6714 = vmatprep.mubr.msk.f32.mxu0 %vm8109_vm0, %v8110_v1  ;;  %6792 = vmatprep.mubr.msk.f32.mxu1 %vm8109_vm0, %v8110_v1 }
  0x60   :  { %7561 = vmatpush3.bf16.msra.mxu0 %v8379_v9  ;;  %7597 = vmatpush3.bf16.msra.mxu1 %v8383_v10 }
  0x61   :  { %6712 = vmatprep.subr.mxu0 %v8110_v1  ;;  %6790 = vmatprep.subr.mxu1 %v8110_v1 }
  0x64   :  { %6713 = vmatpush3.msra.mxu0 %v8359_v5  ;;  %6791 = vmatpush3.msra.mxu1 %v8387_v11 }
  0x65   :  { %7562 = vmatprep.subr.bf16.mxu0 %v8108_v0  ;;  %7598 = vmatprep.subr.bf16.mxu1 %v8108_v0 }
  0x66   :  { %6715 = vmatmul.mubr.f32.vlgmr.msra.gmra.mrb[2].mxu0 %v8235_v49  ;;  %6793 = vmatmul.mubr.f32.vlgmr.msra.gmra.mrb[2].mxu1 %v8235_v49 }
  0x67   :  { %7564 = vmatpush3.bf16.msra.mxu0 %v8249_v53  ;;  %7600 = vmatpush3.bf16.msra.mxu1 %v8251_v54  ;;  %v3684_v54 = vsub.f32 %v8680_v46, %v8689_v48 }
  0x68   :  { %7565 = vmatprep.subr.bf16.mxu0 %v8108_v0  ;;  %7601 = vmatprep.subr.bf16.mxu1 %v8108_v0 }
  0x69   :  { %6727 = vmatprep.mubr.msk.f32.mxu0 %vm8109_vm0, %v8110_v1  ;;  %6805 = vmatprep.mubr.msk.f32.mxu1 %vm8109_vm0, %v8110_v1 }
  0x6b   :  { %7567 = vmatpush3.bf16.msra.mxu0 %v8256_v55  ;;  %7603 = vmatpush3.bf16.msra.mxu1 %v8417_v16 }
  0x6c   :  { %6725 = vmatprep.subr.mxu0 %v8110_v1  ;;  %6803 = vmatprep.subr.mxu1 %v8110_v1 }
  0x6f   :  { %6726 = vmatpush3.msra.mxu0 %v8402_v13  ;;  %6804 = vmatpush3.msra.mxu1 %v8429_v18 }
  0x70   :  { %7568 = vmatprep.subr.bf16.mxu0 %v8108_v0  ;;  %7604 = vmatprep.subr.bf16.mxu1 %v8108_v0 }
  0x71   :  { %6728 = vmatmul.mubr.f32.vlgmr.msra.gmra.mrb[2].mxu0 %v8189_v27  ;;  %6806 = vmatmul.mubr.f32.vlgmr.msra.gmra.mrb[2].mxu1 %v8189_v27 }
  0x72   :  { %7570 = vmatpush3.bf16.msra.mxu0 %v8277_v58  ;;  %7606 = vmatpush3.bf16.msra.mxu1 %v8281_v59 }
  0x73   :  { %7571 = vmatprep.subr.bf16.mxu0 %v8108_v0  ;;  %7607 = vmatprep.subr.bf16.mxu1 %v8108_v0 }
  0x74   :  { %6740 = vmatprep.mubr.msk.f32.mxu0 %vm8109_vm0, %v8110_v1  ;;  %6818 = vmatprep.mubr.msk.f32.mxu1 %vm8109_vm0, %v8110_v1 }
  0x76   :  { %7573 = vmatpush3.bf16.msra.mxu0 %v8243_v51  ;;  %7609 = vmatpush3.bf16.msra.mxu1 %v8443_v19 }
  0x77   :  { %6738 = vmatprep.subr.mxu0 %v8110_v1  ;;  %6816 = vmatprep.subr.mxu1 %v8110_v1 }
  0x7a   :  { %6739 = vmatpush3.msra.mxu0 %v8364_v6  ;;  %6817 = vmatpush3.msra.mxu1 %v8394_v14  ;;  %v4588_v6 = vld [vmem:[#allocation2 + $0x68] sm:$0xff] }
  0x7b   :  { %7574 = vmatprep.subr.bf16.mxu0 %v8108_v0  ;;  %7610 = vmatprep.subr.bf16.mxu1 %v8108_v0 }
  0x7c   :  { %6741 = vmatmul.mubr.f32.vlgmr.msra.gmra.mrb[2].mxu0 %v8207_v33  ;;  %6819 = vmatmul.mubr.f32.vlgmr.msra.gmra.mrb[2].mxu1 %v8207_v33 }
  0x7d   :  { %7576 = vmatpush3.bf16.msra.mxu0 %v8171_v20  ;;  %7612 = vmatpush3.bf16.msra.mxu1 %v8176_v22 }
  0x7e   :  { %7577 = vmatprep.subr.bf16.mxu0 %v8108_v0  ;;  %7613 = vmatprep.subr.bf16.mxu1 %v8108_v0 }
  0x7f   :  { %6753 = vmatprep.mubr.msk.f32.mxu0 %vm8109_vm0, %v8110_v1  ;;  %6831 = vmatprep.mubr.msk.f32.mxu1 %vm8109_vm0, %v8110_v1 }
  0x81   :  { %7579 = vmatpush3.bf16.msra.mxu0 %v8379_v9  ;;  %7615 = vmatpush3.bf16.msra.mxu1 %v8383_v10 }
  0x82   :  { %6751 = vmatprep.subr.mxu0 %v8110_v1  ;;  %6829 = vmatprep.subr.mxu1 %v8110_v1 }
  0x85   :  { %6752 = vmatpush3.msra.mxu0 %v8359_v5  ;;  %6830 = vmatpush3.msra.mxu1 %v8387_v11 }
  0x86   :  { %7580 = vmatprep.subr.bf16.mxu0 %v8108_v0  ;;  %7616 = vmatprep.subr.bf16.mxu1 %v8108_v0 }
  0x87   :  { %6754 = vmatmul.mubr.f32.vlgmr.msra.gmra.mrb[2].mxu0 %v8225_v40  ;;  %6832 = vmatmul.mubr.f32.vlgmr.msra.gmra.mrb[2].mxu1 %v8225_v40 }
  0x88   :  { %7582 = vmatpush3.bf16.msra.mxu0 %v8327_v2  ;;  %7618 = vmatpush3.bf16.msra.mxu1 %v8331_v3  ;;  %v4587_v3 = vld [vmem:[#allocation2 + $0x60] sm:$0xff] }
  0x89   :  { %7583 = vmatprep.subr.bf16.mxu0 %v8108_v0  ;;  %7619 = vmatprep.subr.bf16.mxu1 %v8108_v0  ;;  %v8839_v4 = vand.u32 4294901760, %v4587_v3 }
  0x8a   :  { %6766 = vmatprep.mubr.msk.f32.mxu0 %vm8109_vm0, %v8110_v1  ;;  %6844 = vmatprep.mubr.msk.f32.mxu1 %vm8109_vm0, %v8110_v1 }
  0x8c   :  { %7585 = vmatpush3.bf16.msra.mxu0 %v8247_v52  ;;  %7621 = vmatpush3.bf16.msra.mxu1 %v8483_v21 }
  0x8d   :  { %6764 = vmatprep.subr.mxu0 %v8110_v1  ;;  %6842 = vmatprep.subr.mxu1 %v8110_v1 }
  0x90   :  { %6765 = vmatpush3.msra.mxu0 %v8373_v8  ;;  %6843 = vmatpush3.msra.mxu1 %v8405_v15 }
  0x91   :  { %7586 = vmatprep.subr.bf16.mxu0 %v8108_v0  ;;  %7622 = vmatprep.subr.bf16.mxu1 %v8108_v0 }
  0x92   :  { %6767 = vmatmul.mubr.f32.vlgmr.msra.gmra.mrb[2].mxu0 %v8189_v27  ;;  %6845 = vmatmul.mubr.f32.vlgmr.msra.gmra.mrb[2].mxu1 %v8189_v27 }
  0x93   :  { %7588 = vmatpush3.bf16.msra.mxu0 %v8171_v20  ;;  %7624 = vmatpush3.bf16.msra.mxu1 %v8176_v22  ;;  %v8516_v20 = vsub.f32 %v2567_v23, %v8511_v24  ;;  %v2568_v22 = vld [vmem:[#allocation2 + $0x48] sm:$0xff] }
  0x94   :  { %7589 = vmatprep.subr.bf16.mxu0 %v8108_v0  ;;  %7625 = vmatprep.subr.bf16.mxu1 %v8108_v0  ;;  %v8539_v29 = vand.u32 4294901760, %v2568_v22 }
  0x95   :  { %6779 = vmatprep.mubr.msk.f32.mxu0 %vm8109_vm0, %v8110_v1  ;;  %6857 = vmatprep.mubr.msk.f32.mxu1 %vm8109_vm0, %v8110_v1  ;;  %v8525_v25 = vand.u32 4294901760, %v8516_v20  ;;  %v8603_v41 = vpack.c.bf16 %v8516_v20, %v8394_v14 }
  0x96   :  { %v8546_v30 = vsub.f32 %v2568_v22, %v8539_v29  ;;  %v8695_v50 = vpack.c.bf16 %v8539_v29, %v8511_v24 }
  0x97   :  { %7591 = vmatpush3.bf16.msra.mxu0 %v8379_v9  ;;  %7627 = vmatpush3.bf16.msra.mxu1 %v8383_v10  ;;  %v2674_v31 = vsub.f32 %v8516_v20, %v8525_v25  ;;  %v8647_v43 = vpack.c.bf16 %v8525_v25, %v8405_v15  ;;  %v8891_v15 = vpop.permute.xlu0 %38 }
  0x98   :  { %6777 = vmatprep.subr.mxu0 %v8110_v1  ;;  %6855 = vmatprep.subr.mxu1 %v8110_v1  ;;  %v8557_v34 = vand.u32 4294901760, %v8546_v30  ;;  %v8763_v61 = vpack.c.bf16 %v8546_v30, %v8516_v20  ;;  %v8767_v62 = vpack.c.bf16 %v8680_v46, %v8546_v30 }
  0x99   :  { %v8554_v32 = vand.u32 4294901760, %v2674_v31  ;;  %v5597_v31 = vld [vmem:[#allocation2 + $0x70] sm:$0xff] }
  0x9a   :  { %v2681_v37 = vsub.f32 %v8546_v30, %v8557_v34  ;;  %v8807_v63 = vpack.c.bf16 %v8557_v34, %v8525_v25  ;;  %v8811_v2 = vpack.c.bf16 %v8689_v48, %v8557_v34 }
  0x9b   :  { %6778 = vmatpush3.msra.mxu0 %v8359_v5  ;;  %6856 = vmatpush3.msra.mxu1 %v8387_v11  ;;  %v8573_v36 = vpack.c.bf16 %v8554_v32, %v8429_v18  ;;  %v8844_v5 = vsub.f32 %v4587_v3, %v8839_v4 }
  0x9c   :  { %6780 = vmatmul.mubr.f32.vlgmr.msra.gmra.mrb[2].mxu0 %v8189_v27  ;;  %6858 = vmatmul.mubr.f32.vlgmr.msra.gmra.mrb[2].mxu1 %v8189_v27  ;;  %v8585_v38 = vand.u32 4294901760, %v2681_v37 }
  0x9d   :  { %7628 = vmatprep.subr.bf16.mxu0 %v8108_v0  ;;  %7664 = vmatprep.subr.bf16.mxu1 %v8108_v0  ;;  %v8853_v7 = vand.u32 4294901760, %v8844_v5 }
  0x9e   :  { %7630 = vmatpush3.bf16.msra.mxu0 %v8379_v9  ;;  %7666 = vmatpush3.bf16.msra.mxu1 %v8383_v10  ;;  %v8733_v57 = vpack.c.bf16 %v8585_v38, %v8554_v32 }
  0x9f   :  { %7631 = vmatprep.subr.bf16.mxu0 %v8108_v0  ;;  %7667 = vmatprep.subr.bf16.mxu1 %v8108_v0  ;;  %v4694_v14 = vsub.f32 %v8844_v5, %v8853_v7 }
  0xa0   :  { %6870 = vmatprep.mubr.msk.f32.mxu0 %vm8109_vm0, %v8110_v1  ;;  %6948 = vmatprep.mubr.msk.f32.mxu1 %vm8109_vm0, %v8110_v1 }
  0xa1   :  { %v8882_v12 = vand.u32 4294901760, %v4694_v14 }
  0xa2   :  { %7633 = vmatpush3.bf16.msra.mxu0 %v8531_v26  ;;  %7669 = vmatpush3.bf16.msra.mxu1 %v8535_v28 }
  0xa3   :  { %6868 = vmatprep.subr.mxu0 %v8110_v1  ;;  %6946 = vmatprep.subr.mxu1 %v8110_v1 }
  0xa6   :  { %6869 = vmatpush3.msra.mxu0 %v8511_v24  ;;  %6947 = vmatpush3.msra.mxu1 %v8539_v29 }
  0xa7   :  { %7634 = vmatprep.subr.bf16.mxu0 %v8108_v0  ;;  %7670 = vmatprep.subr.bf16.mxu1 %v8108_v0 }
  0xa8   :  { %6871 = vmatmul.mubr.f32.vlgmr.msra.gmra.mrb[4].mxu0 %v8235_v49  ;;  %6949 = vmatmul.mubr.f32.vlgmr.msra.gmra.mrb[4].mxu1 %v8235_v49 }
  0xa9   :  { %7636 = vmatpush3.bf16.msra.mxu0 %v8256_v55  ;;  %7672 = vmatpush3.bf16.msra.mxu1 %v8417_v16  ;;  %v8718_v55 = vand.u32 4294901760, %v3684_v54 }
  0xaa   :  { %7637 = vmatprep.subr.bf16.mxu0 %v8108_v0  ;;  %7673 = vmatprep.subr.bf16.mxu1 %v8108_v0 }
  0xab   :  { %6883 = vmatprep.mubr.msk.f32.mxu0 %vm8109_vm0, %v8110_v1  ;;  %6961 = vmatprep.mubr.msk.f32.mxu1 %vm8109_vm0, %v8110_v1  ;;  %v8737_v58 = vpack.c.bf16 %v8718_v55, %v8585_v38 }
  0xad   :  { %7639 = vmatpush3.bf16.msra.mxu0 %v8569_v35  ;;  %7675 = vmatpush3.bf16.msra.mxu1 %v8573_v36 }
  0xae   :  { %6881 = vmatprep.subr.mxu0 %v8110_v1  ;;  %6959 = vmatprep.subr.mxu1 %v8110_v1 }
  0xb1   :  { %6882 = vmatpush3.msra.mxu0 %v8554_v32  ;;  %6960 = vmatpush3.msra.mxu1 %v8585_v38  ;;  %v9007_v32 = vand.u32 4294901760, %v5597_v31 }
  0xb2   :  { %7640 = vmatprep.subr.bf16.mxu0 %v8108_v0  ;;  %7676 = vmatprep.subr.bf16.mxu1 %v8108_v0 }
  0xb3   :  { %6884 = vmatmul.mubr.f32.vlgmr.msra.gmra.mrb[4].mxu0 %v8189_v27  ;;  %6962 = vmatmul.mubr.f32.vlgmr.msra.gmra.mrb[4].mxu1 %v8189_v27 }
  0xb4   :  { %7642 = vmatpush3.bf16.msra.mxu0 %v8243_v51  ;;  %7678 = vmatpush3.bf16.msra.mxu1 %v8443_v19  ;;  %v8699_v51 = vpack.c.bf16 %v8675_v45, %v8539_v29 }
  0xb5   :  { %7643 = vmatprep.subr.bf16.mxu0 %v8108_v0  ;;  %7679 = vmatprep.subr.bf16.mxu1 %v8108_v0 }
  0xb6   :  { %6896 = vmatprep.mubr.msk.f32.mxu0 %vm8109_vm0, %v8110_v1  ;;  %6974 = vmatprep.mubr.msk.f32.mxu1 %vm8109_vm0, %v8110_v1 }
  0xb8   :  { %7645 = vmatpush3.bf16.msra.mxu0 %v8599_v39  ;;  %7681 = vmatpush3.bf16.msra.mxu1 %v8603_v41 }
  0xb9   :  { %6894 = vmatprep.subr.mxu0 %v8110_v1  ;;  %6972 = vmatprep.subr.mxu1 %v8110_v1 }
  0xbc   :  { %6895 = vmatpush3.msra.mxu0 %v8516_v20  ;;  %6973 = vmatpush3.msra.mxu1 %v8546_v30 }
  0xbd   :  { %7646 = vmatprep.subr.bf16.mxu0 %v8108_v0  ;;  %7682 = vmatprep.subr.bf16.mxu1 %v8108_v0 }
  0xbe   :  { %6897 = vmatmul.mubr.f32.vlgmr.msra.gmra.mrb[4].mxu0 %v8207_v33  ;;  %6975 = vmatmul.mubr.f32.vlgmr.msra.gmra.mrb[4].mxu1 %v8207_v33 }
  0xbf   :  { %7648 = vmatpush3.bf16.msra.mxu0 %v8379_v9  ;;  %7684 = vmatpush3.bf16.msra.mxu1 %v8383_v10 }
  0xc0   :  { %7649 = vmatprep.subr.bf16.mxu0 %v8108_v0  ;;  %7685 = vmatprep.subr.bf16.mxu1 %v8108_v0 }
  0xc1   :  { %6909 = vmatprep.mubr.msk.f32.mxu0 %vm8109_vm0, %v8110_v1  ;;  %6987 = vmatprep.mubr.msk.f32.mxu1 %vm8109_vm0, %v8110_v1 }
  0xc3   :  { %7651 = vmatpush3.bf16.msra.mxu0 %v8531_v26  ;;  %7687 = vmatpush3.bf16.msra.mxu1 %v8535_v28 }
  0xc4   :  { %6907 = vmatprep.subr.mxu0 %v8110_v1  ;;  %6985 = vmatprep.subr.mxu1 %v8110_v1 }
  0xc7   :  { %6908 = vmatpush3.msra.mxu0 %v8511_v24  ;;  %6986 = vmatpush3.msra.mxu1 %v8539_v29 }
  0xc8   :  { %7652 = vmatprep.subr.bf16.mxu0 %v8108_v0  ;;  %7688 = vmatprep.subr.bf16.mxu1 %v8108_v0 }
  0xc9   :  { %6910 = vmatmul.mubr.f32.vlgmr.msra.gmra.mrb[4].mxu0 %v8225_v40  ;;  %6988 = vmatmul.mubr.f32.vlgmr.msra.gmra.mrb[4].mxu1 %v8225_v40 }
  0xca   :  { %7654 = vmatpush3.bf16.msra.mxu0 %v8247_v52  ;;  %7690 = vmatpush3.bf16.msra.mxu1 %v8483_v21  ;;  %v8703_v52 = vand.u32 4294901760, %v3578_v47 }
  0xcb   :  { %7655 = vmatprep.subr.bf16.mxu0 %v8108_v0  ;;  %7691 = vmatprep.subr.bf16.mxu1 %v8108_v0 }
  0xcc   :  { %6922 = vmatprep.mubr.msk.f32.mxu0 %vm8109_vm0, %v8110_v1  ;;  %7000 = vmatprep.mubr.msk.f32.mxu1 %vm8109_vm0, %v8110_v1  ;;  %v8710_v53 = vsub.f32 %v3578_v47, %v8703_v52  ;;  %v8859_v8 = vpack.c.bf16 %v8703_v52, %v8675_v45 }
  0xce   :  { %7657 = vmatpush3.bf16.msra.mxu0 %v8643_v42  ;;  %7693 = vmatpush3.bf16.msra.mxu1 %v8647_v43  ;;  %v8721_v56 = vand.u32 4294901760, %v8710_v53 }
  0xcf   :  { %6920 = vmatprep.subr.mxu0 %v8110_v1  ;;  %6998 = vmatprep.subr.mxu1 %v8110_v1 }
  0xd0   :  { %v3691_v59 = vsub.f32 %v8710_v53, %v8721_v56  ;;  %v8979_v30 = vpack.c.bf16 %v8853_v7, %v8721_v56 }
  0xd2   :  { %6921 = vmatpush3.msra.mxu0 %v8525_v25  ;;  %6999 = vmatpush3.msra.mxu1 %v8557_v34  ;;  %v8749_v60 = vand.u32 4294901760, %v3691_v59  ;;  %v9012_v34 = vsub.f32 %v5597_v31, %v9007_v32 }
  0xd3   :  { %7658 = vmatprep.subr.bf16.mxu0 %v8108_v0  ;;  %7694 = vmatprep.subr.bf16.mxu1 %v8108_v0 }
  0xd4   :  { %6923 = vmatmul.mubr.f32.vlgmr.msra.gmra.mrb[4].mxu0 %v8189_v27  ;;  %7001 = vmatmul.mubr.f32.vlgmr.msra.gmra.mrb[4].mxu1 %v8189_v27  ;;  %v8899_v16 = vpack.c.bf16 %v8749_v60, %v8718_v55  ;;  %v8903_v17 = vpack.c.bf16 %v8882_v12, %v8749_v60 }
  0xd5   :  { %7660 = vmatpush3.bf16.msra.mxu0 %v8379_v9  ;;  %7696 = vmatpush3.bf16.msra.mxu1 %v8383_v10  ;;  %v8863_v9 = vpack.c.bf16 %v8839_v4, %v8703_v52  ;;  %v8867_v10 = vand.u32 4294901760, %v4588_v6 }
  0xd6   :  { %7661 = vmatprep.subr.bf16.mxu0 %v8108_v0  ;;  %7697 = vmatprep.subr.bf16.mxu1 %v8108_v0 }
  0xd7   :  { %6935 = vmatprep.mubr.msk.f32.mxu0 %vm8109_vm0, %v8110_v1  ;;  %7013 = vmatprep.mubr.msk.f32.mxu1 %vm8109_vm0, %v8110_v1  ;;  %v8874_v11 = vsub.f32 %v4588_v6, %v8867_v10  ;;  %v9027_v37 = vpack.c.bf16 %v8867_v10, %v8839_v4  ;;  %v9031_v38 = vpack.c.bf16 %v9007_v32, %v8867_v10 }
  0xd9   :  { %7663 = vmatpush3.bf16.msra.mxu0 %v8531_v26  ;;  %7699 = vmatpush3.bf16.msra.mxu1 %v8535_v28  ;;  %v8885_v13 = vand.u32 4294901760, %v8874_v11 }
  0xda   :  { %6933 = vmatprep.subr.mxu0 %v8110_v1  ;;  %7011 = vmatprep.subr.mxu1 %v8110_v1 }
  0xdb   :  { %v4701_v18 = vsub.f32 %v8874_v11, %v8885_v13 }
  0xdd   :  { %6934 = vmatpush3.msra.mxu0 %v8511_v24  ;;  %7012 = vmatpush3.msra.mxu1 %v8539_v29  ;;  %v8917_v25 = vand.u32 4294901760, %v4701_v18  ;;  %v8975_v29 = vpack.c.bf16 %v8721_v56, %v8689_v48 }
  0xde   :  { %6936 = vmatmul.mubr.f32.vlgmr.msra.gmra.mrb[4].mxu0 %v8189_v27  ;;  %7014 = vmatmul.mubr.f32.vlgmr.msra.gmra.mrb[4].mxu1 %v8189_v27 }
  0xdf   :  { %7700 = vmatprep.subr.bf16.mxu0 %v8108_v0  ;;  %7736 = vmatprep.subr.bf16.mxu1 %v8108_v0 }
  0xe0   :  { %7702 = vmatpush3.bf16.msra.mxu0 %v8531_v26  ;;  %7738 = vmatpush3.bf16.msra.mxu1 %v8535_v28 }
  0xe1   :  { %7703 = vmatprep.subr.bf16.mxu0 %v8108_v0  ;;  %7739 = vmatprep.subr.bf16.mxu1 %v8108_v0 }
  0xe2   :  { %7026 = vmatprep.mubr.msk.f32.mxu0 %vm8109_vm0, %v8110_v1  ;;  %7104 = vmatprep.mubr.msk.f32.mxu1 %vm8109_vm0, %v8110_v1 }
  0xe4   :  { %7705 = vmatpush3.bf16.msra.mxu0 %v8695_v50  ;;  %7741 = vmatpush3.bf16.msra.mxu1 %v8699_v51 }
  0xe5   :  { %7024 = vmatprep.subr.mxu0 %v8110_v1  ;;  %7102 = vmatprep.subr.mxu1 %v8110_v1 }
  0xe8   :  { %7025 = vmatpush3.msra.mxu0 %v8675_v45  ;;  %7103 = vmatpush3.msra.mxu1 %v8703_v52 }
  0xe9   :  { %7706 = vmatprep.subr.bf16.mxu0 %v8108_v0  ;;  %7742 = vmatprep.subr.bf16.mxu1 %v8108_v0 }
  0xea   :  { %7027 = vmatmul.mubr.f32.vlgmr.msra.gmra.mrb[6].mxu0 %v8235_v49  ;;  %7105 = vmatmul.mubr.f32.vlgmr.msra.gmra.mrb[6].mxu1 %v8235_v49 }
  0xeb   :  { %7708 = vmatpush3.bf16.msra.mxu0 %v8569_v35  ;;  %7744 = vmatpush3.bf16.msra.mxu1 %v8573_v36  ;;  %v5598_v35 = vld [vmem:[#allocation2 + $0x78] sm:$0xff]  ;;  %v9021_v36 = vand.u32 4294901760, %v9012_v34 }
  0xec   :  { %7709 = vmatprep.subr.bf16.mxu0 %v8108_v0  ;;  %7745 = vmatprep.subr.bf16.mxu1 %v8108_v0 }
  0xed   :  { %7039 = vmatprep.mubr.msk.f32.mxu0 %vm8109_vm0, %v8110_v1  ;;  %7117 = vmatprep.mubr.msk.f32.mxu1 %vm8109_vm0, %v8110_v1 }
  0xef   :  { %7711 = vmatpush3.bf16.msra.mxu0 %v8733_v57  ;;  %7747 = vmatpush3.bf16.msra.mxu1 %v8737_v58 }
  0xf0   :  { %7037 = vmatprep.subr.mxu0 %v8110_v1  ;;  %7115 = vmatprep.subr.mxu1 %v8110_v1 }
  0xf3   :  { %7038 = vmatpush3.msra.mxu0 %v8718_v55  ;;  %7116 = vmatpush3.msra.mxu1 %v8749_v60  ;;  %v7860_v55 = vpack.c.bf16 %v8874_v11, %v8844_v5 }
  0xf4   :  { %7712 = vmatprep.subr.bf16.mxu0 %v8108_v0  ;;  %7748 = vmatprep.subr.bf16.mxu1 %v8108_v0 }
  0xf5   :  { %7040 = vmatmul.mubr.f32.vlgmr.msra.gmra.mrb[6].mxu0 %v8189_v27  ;;  %7118 = vmatmul.mubr.f32.vlgmr.msra.gmra.mrb[6].mxu1 %v8189_v27 }
  0xf6   :  { %7714 = vmatpush3.bf16.msra.mxu0 %v8599_v39  ;;  %7750 = vmatpush3.bf16.msra.mxu1 %v8603_v41  ;;  %v9035_v39 = vand.u32 4294901760, %v5598_v35 }
  0xf7   :  { %7715 = vmatprep.subr.bf16.mxu0 %v8108_v0  ;;  %7751 = vmatprep.subr.bf16.mxu1 %v8108_v0 }
  0xf8   :  { %7052 = vmatprep.mubr.msk.f32.mxu0 %vm8109_vm0, %v8110_v1  ;;  %7130 = vmatprep.mubr.msk.f32.mxu1 %vm8109_vm0, %v8110_v1  ;;  %v9042_v41 = vsub.f32 %v5598_v35, %v9035_v39 }
  0xfa   :  { %7717 = vmatpush3.bf16.msra.mxu0 %v8763_v61  ;;  %7753 = vmatpush3.bf16.msra.mxu1 %v8767_v62  ;;  %v5710_v44 = vand.u32 4294901760, %v9042_v41 }
  0xfb   :  { %7050 = vmatprep.subr.mxu0 %v8110_v1  ;;  %7128 = vmatprep.subr.mxu1 %v8110_v1 }
  0xfc   :  { %v5711_v47 = vsub.f32 %v9042_v41, %v5710_v44 }
  0xfe   :  { %7051 = vmatpush3.msra.mxu0 %v8680_v46  ;;  %7129 = vmatpush3.msra.mxu1 %v8710_v53  ;;  %v5712_v54 = vand.u32 4294901760, %v5711_v47 }
  0xff   :  { %7718 = vmatprep.subr.bf16.mxu0 %v8108_v0  ;;  %7754 = vmatprep.subr.bf16.mxu1 %v8108_v0 }
 0x100   :  { %7053 = vmatmul.mubr.f32.vlgmr.msra.gmra.mrb[6].mxu0 %v8207_v33  ;;  %7131 = vmatmul.mubr.f32.vlgmr.msra.gmra.mrb[6].mxu1 %v8207_v33 }
 0x101   :  { %7720 = vmatpush3.bf16.msra.mxu0 %v8531_v26  ;;  %7756 = vmatpush3.bf16.msra.mxu1 %v8535_v28 }
 0x102   :  { %7721 = vmatprep.subr.bf16.mxu0 %v8108_v0  ;;  %7757 = vmatprep.subr.bf16.mxu1 %v8108_v0 }
 0x103   :  { %7065 = vmatprep.mubr.msk.f32.mxu0 %vm8109_vm0, %v8110_v1  ;;  %7143 = vmatprep.mubr.msk.f32.mxu1 %vm8109_vm0, %v8110_v1 }
 0x105   :  { %7723 = vmatpush3.bf16.msra.mxu0 %v8695_v50  ;;  %7759 = vmatpush3.bf16.msra.mxu1 %v8699_v51 }
 0x106   :  { %7063 = vmatprep.subr.mxu0 %v8110_v1  ;;  %7141 = vmatprep.subr.mxu1 %v8110_v1 }
 0x109   :  { %7064 = vmatpush3.msra.mxu0 %v8675_v45  ;;  %7142 = vmatpush3.msra.mxu1 %v8703_v52 }
 0x10a   :  { %7724 = vmatprep.subr.bf16.mxu0 %v8108_v0  ;;  %7760 = vmatprep.subr.bf16.mxu1 %v8108_v0 }
 0x10b   :  { %7066 = vmatmul.mubr.f32.vlgmr.msra.gmra.mrb[6].mxu0 %v8225_v40  ;;  %7144 = vmatmul.mubr.f32.vlgmr.msra.gmra.mrb[6].mxu1 %v8225_v40 }
 0x10c   :  { %7726 = vmatpush3.bf16.msra.mxu0 %v8643_v42  ;;  %7762 = vmatpush3.bf16.msra.mxu1 %v8647_v43  ;;  %v5704_v42 = vsub.f32 %v9012_v34, %v9021_v36 }
 0x10d   :  { %7727 = vmatprep.subr.bf16.mxu0 %v8108_v0  ;;  %7763 = vmatprep.subr.bf16.mxu1 %v8108_v0 }
 0x10e   :  { %7078 = vmatprep.mubr.msk.f32.mxu0 %vm8109_vm0, %v8110_v1  ;;  %7156 = vmatprep.mubr.msk.f32.mxu1 %vm8109_vm0, %v8110_v1  ;;  %v5705_v43 = vand.u32 4294901760, %v5704_v42 }
 0x110   :  { %7729 = vmatpush3.bf16.msra.mxu0 %v8807_v63  ;;  %7765 = vmatpush3.bf16.msra.mxu1 %v8811_v2 }
 0x111   :  { %7076 = vmatprep.subr.mxu0 %v8110_v1  ;;  %7154 = vmatprep.subr.mxu1 %v8110_v1 }
 0x114   :  { %7077 = vmatpush3.msra.mxu0 %v8689_v48  ;;  %7155 = vmatpush3.msra.mxu1 %v8721_v56  ;;  %v7896_v56 = vpack.c.bf16 %v9012_v34, %v8874_v11 }
 0x115   :  { %7730 = vmatprep.subr.bf16.mxu0 %v8108_v0  ;;  %7766 = vmatprep.subr.bf16.mxu1 %v8108_v0 }
 0x116   :  { %7079 = vmatmul.mubr.f32.vlgmr.msra.gmra.mrb[6].mxu0 %v8189_v27  ;;  %7157 = vmatmul.mubr.f32.vlgmr.msra.gmra.mrb[6].mxu1 %v8189_v27 }
 0x117   :  { %7732 = vmatpush3.bf16.msra.mxu0 %v8531_v26  ;;  %7768 = vmatpush3.bf16.msra.mxu1 %v8535_v28  ;;  %v8931_v26 = vpack.c.bf16 %v8710_v53, %v8680_v46  ;;  %v8935_v28 = vpack.c.bf16 %v8844_v5, %v8710_v53  ;;  %v7890_v46 = vpack.c.bf16 %v5705_v43, %v8917_v25 }
 0x118   :  { %7733 = vmatprep.subr.bf16.mxu0 %v8108_v0  ;;  %7769 = vmatprep.subr.bf16.mxu1 %v8108_v0 }
 0x119   :  { %7091 = vmatprep.mubr.msk.f32.mxu0 %vm8109_vm0, %v8110_v1  ;;  %7169 = vmatprep.mubr.msk.f32.mxu1 %vm8109_vm0, %v8110_v1 }
 0x11b   :  { %7735 = vmatpush3.bf16.msra.mxu0 %v8695_v50  ;;  %7771 = vmatpush3.bf16.msra.mxu1 %v8699_v51 }
 0x11c   :  { %7089 = vmatprep.subr.mxu0 %v8110_v1  ;;  %7167 = vmatprep.subr.mxu1 %v8110_v1 }
 0x11f   :  { %7090 = vmatpush3.msra.mxu0 %v8675_v45  ;;  %7168 = vmatpush3.msra.mxu1 %v8703_v52  ;;  %v7854_v45 = vpack.c.bf16 %v8917_v25, %v8882_v12 }
 0x120   :  { %7092 = vmatmul.mubr.f32.vlgmr.msra.gmra.mrb[6].mxu0 %v8189_v27  ;;  %7170 = vmatmul.mubr.f32.vlgmr.msra.gmra.mrb[6].mxu1 %v8189_v27 }
 0x121   :  { %7772 = vmatprep.subr.bf16.mxu0 %v8108_v0  ;;  %7808 = vmatprep.subr.bf16.mxu1 %v8108_v0 }
 0x122   :  { %7774 = vmatpush3.bf16.msra.mxu0 %v8695_v50  ;;  %7810 = vmatpush3.bf16.msra.mxu1 %v8699_v51 }
 0x123   :  { %7775 = vmatprep.subr.bf16.mxu0 %v8108_v0  ;;  %7811 = vmatprep.subr.bf16.mxu1 %v8108_v0 }
 0x124   :  { %7182 = vmatprep.mubr.msk.f32.mxu0 %vm8109_vm0, %v8110_v1  ;;  %7260 = vmatprep.mubr.msk.f32.mxu1 %vm8109_vm0, %v8110_v1 }
 0x126   :  { %7777 = vmatpush3.bf16.msra.mxu0 %v8859_v8  ;;  %7813 = vmatpush3.bf16.msra.mxu1 %v8863_v9 }
 0x127   :  { %7180 = vmatprep.subr.mxu0 %v8110_v1  ;;  %7258 = vmatprep.subr.mxu1 %v8110_v1 }
 0x12a   :  { %7181 = vmatpush3.msra.mxu0 %v8839_v4  ;;  %7259 = vmatpush3.msra.mxu1 %v8867_v10 }
 0x12b   :  { %7778 = vmatprep.subr.bf16.mxu0 %v8108_v0  ;;  %7814 = vmatprep.subr.bf16.mxu1 %v8108_v0 }
 0x12c   :  { %7183 = vmatmul.mubr.f32.vlgmr.msra.gmra.mrb[8].mxu0 %v8235_v49  ;;  %7261 = vmatmul.mubr.f32.vlgmr.msra.gmra.mrb[8].mxu1 %v8235_v49 }
 0x12d   :  { %7780 = vmatpush3.bf16.msra.mxu0 %v8733_v57  ;;  %7816 = vmatpush3.bf16.msra.mxu1 %v8737_v58  ;;  %v539_v19 = vpop.f32.mrb[0].mxu0  ;;  %v1043_v21 = vpop.f32.mrb[0].mxu1  ;;  %v7908_v57 = vpack.c.bf16 %v9021_v36, %v8885_v13 }
 0x12e   :  { %7781 = vmatprep.subr.bf16.mxu0 %v8108_v0  ;;  %7817 = vmatprep.subr.bf16.mxu1 %v8108_v0  ;;  %v7916_v23 = vadd.f32 %v539_v19, %v8891_v15  ;;  %v7917_v24 = vadd.f32 %v1043_v21, %v8891_v15  ;;  %v6625_v20 = vpop.f32.mrb[1].mxu0  ;;  %v6703_v22 = vpop.f32.mrb[1].mxu1 }
 0x12f   :  { %7195 = vmatprep.mubr.msk.f32.mxu0 %vm8109_vm0, %v8110_v1  ;;  %7273 = vmatprep.mubr.msk.f32.mxu1 %vm8109_vm0, %v8110_v1 }
 0x130   :  { %543 = vst [vmem:[#allocation5] sm:$0xff] %v7916_v23  ;;  %1048 = vst [vmem:[#allocation5 + $0x8] sm:$0xff] %v7917_v24 }
 0x131   :  { %7783 = vmatpush3.bf16.msra.mxu0 %v8899_v16  ;;  %7819 = vmatpush3.bf16.msra.mxu1 %v8903_v17 }
 0x132   :  { %7193 = vmatprep.subr.mxu0 %v8110_v1  ;;  %7271 = vmatprep.subr.mxu1 %v8110_v1 }
 0x135   :  { %7194 = vmatpush3.msra.mxu0 %v8882_v12  ;;  %7272 = vmatpush3.msra.mxu1 %v8917_v25 }
 0x136   :  { %7784 = vmatprep.subr.bf16.mxu0 %v8108_v0  ;;  %7820 = vmatprep.subr.bf16.mxu1 %v8108_v0 }
 0x137   :  { %7196 = vmatmul.mubr.f32.vlgmr.msra.gmra.mrb[8].mxu0 %v8189_v27  ;;  %7274 = vmatmul.mubr.f32.vlgmr.msra.gmra.mrb[8].mxu1 %v8189_v27 }
 0x138   :  { %7786 = vmatpush3.bf16.msra.mxu0 %v8763_v61  ;;  %7822 = vmatpush3.bf16.msra.mxu1 %v8767_v62 }
 0x139   :  { %7787 = vmatprep.subr.bf16.mxu0 %v8108_v0  ;;  %7823 = vmatprep.subr.bf16.mxu1 %v8108_v0 }
 0x13a   :  { %7208 = vmatprep.mubr.msk.f32.mxu0 %vm8109_vm0, %v8110_v1  ;;  %7286 = vmatprep.mubr.msk.f32.mxu1 %vm8109_vm0, %v8110_v1 }
 0x13c   :  { %7789 = vmatpush3.bf16.msra.mxu0 %v8931_v26  ;;  %7825 = vmatpush3.bf16.msra.mxu1 %v8935_v28 }
 0x13d   :  { %7206 = vmatprep.subr.mxu0 %v8110_v1  ;;  %7284 = vmatprep.subr.mxu1 %v8110_v1 }
 0x140   :  { %7207 = vmatpush3.msra.mxu0 %v8844_v5  ;;  %7285 = vmatpush3.msra.mxu1 %v8874_v11 }
 0x141   :  { %7790 = vmatprep.subr.bf16.mxu0 %v8108_v0  ;;  %7826 = vmatprep.subr.bf16.mxu1 %v8108_v0 }
 0x142   :  { %7209 = vmatmul.mubr.f32.vlgmr.msra.gmra.mrb[8].mxu0 %v8207_v33  ;;  %7287 = vmatmul.mubr.f32.vlgmr.msra.gmra.mrb[8].mxu1 %v8207_v33 }
 0x143   :  { %7792 = vmatpush3.bf16.msra.mxu0 %v8695_v50  ;;  %7828 = vmatpush3.bf16.msra.mxu1 %v8699_v51 }
 0x144   :  { %7793 = vmatprep.subr.bf16.mxu0 %v8108_v0  ;;  %7829 = vmatprep.subr.bf16.mxu1 %v8108_v0 }
 0x145   :  { %7221 = vmatprep.mubr.msk.f32.mxu0 %vm8109_vm0, %v8110_v1  ;;  %7299 = vmatprep.mubr.msk.f32.mxu1 %vm8109_vm0, %v8110_v1 }
 0x147   :  { %7795 = vmatpush3.bf16.msra.mxu0 %v8859_v8  ;;  %7831 = vmatpush3.bf16.msra.mxu1 %v8863_v9 }
 0x148   :  { %7219 = vmatprep.subr.mxu0 %v8110_v1  ;;  %7297 = vmatprep.subr.mxu1 %v8110_v1 }
 0x14b   :  { %7220 = vmatpush3.msra.mxu0 %v8839_v4  ;;  %7298 = vmatpush3.msra.mxu1 %v8867_v10 }
 0x14c   :  { %7796 = vmatprep.subr.bf16.mxu0 %v8108_v0  ;;  %7832 = vmatprep.subr.bf16.mxu1 %v8108_v0 }
 0x14d   :  { %7222 = vmatmul.mubr.f32.vlgmr.msra.gmra.mrb[8].mxu0 %v8225_v40  ;;  %7300 = vmatmul.mubr.f32.vlgmr.msra.gmra.mrb[8].mxu1 %v8225_v40 }
 0x14e   :  { %7798 = vmatpush3.bf16.msra.mxu0 %v8807_v63  ;;  %7834 = vmatpush3.bf16.msra.mxu1 %v8811_v2 }
 0x14f   :  { %7799 = vmatprep.subr.bf16.mxu0 %v8108_v0  ;;  %7835 = vmatprep.subr.bf16.mxu1 %v8108_v0 }
 0x150   :  { %7234 = vmatprep.mubr.msk.f32.mxu0 %vm8109_vm0, %v8110_v1  ;;  %7312 = vmatprep.mubr.msk.f32.mxu1 %vm8109_vm0, %v8110_v1 }
 0x152   :  { %7801 = vmatpush3.bf16.msra.mxu0 %v8975_v29  ;;  %7837 = vmatpush3.bf16.msra.mxu1 %v8979_v30 }
 0x153   :  { %7232 = vmatprep.subr.mxu0 %v8110_v1  ;;  %7310 = vmatprep.subr.mxu1 %v8110_v1 }
 0x156   :  { %7233 = vmatpush3.msra.mxu0 %v8853_v7  ;;  %7311 = vmatpush3.msra.mxu1 %v8885_v13 }
 0x157   :  { %7802 = vmatprep.subr.bf16.mxu0 %v8108_v0  ;;  %7838 = vmatprep.subr.bf16.mxu1 %v8108_v0 }
 0x158   :  { %7235 = vmatmul.mubr.f32.vlgmr.msra.gmra.mrb[8].mxu0 %v8189_v27  ;;  %7313 = vmatmul.mubr.f32.vlgmr.msra.gmra.mrb[8].mxu1 %v8189_v27 }
 0x159   :  { %7804 = vmatpush3.bf16.msra.mxu0 %v8695_v50  ;;  %7840 = vmatpush3.bf16.msra.mxu1 %v8699_v51 }
 0x15a   :  { %7805 = vmatprep.subr.bf16.mxu0 %v8108_v0  ;;  %7841 = vmatprep.subr.bf16.mxu1 %v8108_v0 }
 0x15b   :  { %7247 = vmatprep.mubr.msk.f32.mxu0 %vm8109_vm0, %v8110_v1  ;;  %7325 = vmatprep.mubr.msk.f32.mxu1 %vm8109_vm0, %v8110_v1 }
 0x15d   :  { %7807 = vmatpush3.bf16.msra.mxu0 %v8859_v8  ;;  %7843 = vmatpush3.bf16.msra.mxu1 %v8863_v9 }
 0x15e   :  { %7245 = vmatprep.subr.mxu0 %v8110_v1  ;;  %7323 = vmatprep.subr.mxu1 %v8110_v1 }
 0x161   :  { %7246 = vmatpush3.msra.mxu0 %v8839_v4  ;;  %7324 = vmatpush3.msra.mxu1 %v8867_v10 }
 0x162   :  { %7248 = vmatmul.mubr.f32.vlgmr.msra.gmra.mrb[8].mxu0 %v8189_v27  ;;  %7326 = vmatmul.mubr.f32.vlgmr.msra.gmra.mrb[8].mxu1 %v8189_v27 }
 0x163   :  { %7844 = vmatprep.subr.bf16.mxu0 %v8108_v0  ;;  %7880 = vmatprep.subr.bf16.mxu1 %v8108_v0 }
 0x164   :  { %7846 = vmatpush3.bf16.msra.mxu0 %v8859_v8  ;;  %7882 = vmatpush3.bf16.msra.mxu1 %v8863_v9 }
 0x165   :  { %7847 = vmatprep.subr.bf16.mxu0 %v8108_v0  ;;  %7883 = vmatprep.subr.bf16.mxu1 %v8108_v0 }
 0x166   :  { %7338 = vmatprep.mubr.msk.f32.mxu0 %vm8109_vm0, %v8110_v1  ;;  %7416 = vmatprep.mubr.msk.f32.mxu1 %vm8109_vm0, %v8110_v1 }
 0x168   :  { %7849 = vmatpush3.bf16.msra.mxu0 %v9027_v37  ;;  %7885 = vmatpush3.bf16.msra.mxu1 %v9031_v38 }
 0x169   :  { %7336 = vmatprep.subr.mxu0 %v8110_v1  ;;  %7414 = vmatprep.subr.mxu1 %v8110_v1 }
 0x16c   :  { %7337 = vmatpush3.msra.mxu0 %v9007_v32  ;;  %7415 = vmatpush3.msra.mxu1 %v9035_v39 }
 0x16d   :  { %7850 = vmatprep.subr.bf16.mxu0 %v8108_v0  ;;  %7886 = vmatprep.subr.bf16.mxu1 %v8108_v0 }
 0x16e   :  { %7339 = vmatmul.mubr.f32.vlgmr.msra.gmra.mrb[10].mxu0 %v8235_v49  ;;  %7417 = vmatmul.mubr.f32.vlgmr.msra.gmra.mrb[10].mxu1 %v8235_v49 }
 0x16f   :  { %7852 = vmatpush3.bf16.msra.mxu0 %v8899_v16  ;;  %7888 = vmatpush3.bf16.msra.mxu1 %v8903_v17  ;;  %v1548_v48 = vpop.f32.mrb[2].mxu0  ;;  %v2053_v50 = vpop.f32.mrb[2].mxu1 }
 0x170   :  { %7853 = vmatprep.subr.bf16.mxu0 %v8108_v0  ;;  %7889 = vmatprep.subr.bf16.mxu1 %v8108_v0  ;;  %v7918_v49 = vadd.f32 %v1548_v48, %v8891_v15  ;;  %v7919_v51 = vadd.f32 %v2053_v50, %v8891_v15  ;;  %v6781_v52 = vpop.f32.mrb[3].mxu0  ;;  %v6859_v53 = vpop.f32.mrb[3].mxu1 }
 0x171   :  { %7351 = vmatprep.mubr.msk.f32.mxu0 %vm8109_vm0, %v8110_v1  ;;  %7429 = vmatprep.mubr.msk.f32.mxu1 %vm8109_vm0, %v8110_v1 }
 0x172   :  { %1553 = vst [vmem:[#allocation5 + $0x10] sm:$0xff] %v7918_v49  ;;  %2058 = vst [vmem:[#allocation5 + $0x18] sm:$0xff] %v7919_v51 }
 0x173   :  { %7855 = vmatpush3.bf16.msra.mxu0 %v7854_v45  ;;  %7891 = vmatpush3.bf16.msra.mxu1 %v7890_v46 }
 0x174   :  { %7349 = vmatprep.subr.mxu0 %v8110_v1  ;;  %7427 = vmatprep.subr.mxu1 %v8110_v1 }
 0x177   :  { %7350 = vmatpush3.msra.mxu0 %v5705_v43  ;;  %7428 = vmatpush3.msra.mxu1 %v5712_v54 }
 0x178   :  { %7856 = vmatprep.subr.bf16.mxu0 %v8108_v0  ;;  %7892 = vmatprep.subr.bf16.mxu1 %v8108_v0 }
 0x179   :  { %7352 = vmatmul.mubr.f32.vlgmr.msra.gmra.mrb[10].mxu0 %v8189_v27  ;;  %7430 = vmatmul.mubr.f32.vlgmr.msra.gmra.mrb[10].mxu1 %v8189_v27 }
 0x17a   :  { %7858 = vmatpush3.bf16.msra.mxu0 %v8931_v26  ;;  %7894 = vmatpush3.bf16.msra.mxu1 %v8935_v28 }
 0x17b   :  { %7859 = vmatprep.subr.bf16.mxu0 %v8108_v0  ;;  %7895 = vmatprep.subr.bf16.mxu1 %v8108_v0 }
 0x17c   :  { %7364 = vmatprep.mubr.msk.f32.mxu0 %vm8109_vm0, %v8110_v1  ;;  %7442 = vmatprep.mubr.msk.f32.mxu1 %vm8109_vm0, %v8110_v1 }
 0x17e   :  { %7861 = vmatpush3.bf16.msra.mxu0 %v7860_v55  ;;  %7897 = vmatpush3.bf16.msra.mxu1 %v7896_v56 }
 0x17f   :  { %7362 = vmatprep.subr.mxu0 %v8110_v1  ;;  %7440 = vmatprep.subr.mxu1 %v8110_v1 }
 0x182   :  { %7363 = vmatpush3.msra.mxu0 %v9012_v34  ;;  %7441 = vmatpush3.msra.mxu1 %v9042_v41 }
 0x183   :  { %7862 = vmatprep.subr.bf16.mxu0 %v8108_v0  ;;  %7898 = vmatprep.subr.bf16.mxu1 %v8108_v0 }
 0x184   :  { %7365 = vmatmul.mubr.f32.vlgmr.msra.gmra.mrb[10].mxu0 %v8207_v33  ;;  %7443 = vmatmul.mubr.f32.vlgmr.msra.gmra.mrb[10].mxu1 %v8207_v33  ;;  %v7872_v33 = vpack.c.bf16 %v8885_v13, %v8853_v7 }
 0x185   :  { %7864 = vmatpush3.bf16.msra.mxu0 %v8859_v8  ;;  %7900 = vmatpush3.bf16.msra.mxu1 %v8863_v9 }
 0x186   :  { %7865 = vmatprep.subr.bf16.mxu0 %v8108_v0  ;;  %7901 = vmatprep.subr.bf16.mxu1 %v8108_v0 }
 0x187   :  { %7377 = vmatprep.mubr.msk.f32.mxu0 %vm8109_vm0, %v8110_v1  ;;  %7455 = vmatprep.mubr.msk.f32.mxu1 %vm8109_vm0, %v8110_v1 }
 0x189   :  { %7867 = vmatpush3.bf16.msra.mxu0 %v9027_v37  ;;  %7903 = vmatpush3.bf16.msra.mxu1 %v9031_v38 }
 0x18a   :  { %7375 = vmatprep.subr.mxu0 %v8110_v1  ;;  %7453 = vmatprep.subr.mxu1 %v8110_v1 }
 0x18d   :  { %7376 = vmatpush3.msra.mxu0 %v9007_v32  ;;  %7454 = vmatpush3.msra.mxu1 %v9035_v39 }
 0x18e   :  { %7868 = vmatprep.subr.bf16.mxu0 %v8108_v0  ;;  %7904 = vmatprep.subr.bf16.mxu1 %v8108_v0 }
 0x18f   :  { %7378 = vmatmul.mubr.f32.vlgmr.msra.gmra.mrb[10].mxu0 %v8225_v40  ;;  %7456 = vmatmul.mubr.f32.vlgmr.msra.gmra.mrb[10].mxu1 %v8225_v40 }
 0x190   :  { %7870 = vmatpush3.bf16.msra.mxu0 %v8975_v29  ;;  %7906 = vmatpush3.bf16.msra.mxu1 %v8979_v30 }
 0x191   :  { %7871 = vmatprep.subr.bf16.mxu0 %v8108_v0  ;;  %7907 = vmatprep.subr.bf16.mxu1 %v8108_v0 }
 0x192   :  { %7390 = vmatprep.mubr.msk.f32.mxu0 %vm8109_vm0, %v8110_v1  ;;  %7468 = vmatprep.mubr.msk.f32.mxu1 %vm8109_vm0, %v8110_v1 }
 0x194   :  { %7873 = vmatpush3.bf16.msra.mxu0 %v7872_v33  ;;  %7909 = vmatpush3.bf16.msra.mxu1 %v7908_v57 }
 0x195   :  { %7388 = vmatprep.subr.mxu0 %v8110_v1  ;;  %7466 = vmatprep.subr.mxu1 %v8110_v1 }
 0x198   :  { %7389 = vmatpush3.msra.mxu0 %v9021_v36  ;;  %7467 = vmatpush3.msra.mxu1 %v5710_v44 }
 0x199   :  { %7874 = vmatprep.subr.bf16.mxu0 %v8108_v0  ;;  %7910 = vmatprep.subr.bf16.mxu1 %v8108_v0 }
 0x19a   :  { %7391 = vmatmul.mubr.f32.vlgmr.msra.gmra.mrb[10].mxu0 %v8189_v27  ;;  %7469 = vmatmul.mubr.f32.vlgmr.msra.gmra.mrb[10].mxu1 %v8189_v27 }
 0x19b   :  { %7876 = vmatpush3.bf16.msra.mxu0 %v8859_v8  ;;  %7912 = vmatpush3.bf16.msra.mxu1 %v8863_v9 }
 0x19c   :  { %7877 = vmatprep.subr.bf16.mxu0 %v8108_v0  ;;  %7913 = vmatprep.subr.bf16.mxu1 %v8108_v0 }
 0x19d   :  { %7403 = vmatprep.mubr.msk.f32.mxu0 %vm8109_vm0, %v8110_v1  ;;  %7481 = vmatprep.mubr.msk.f32.mxu1 %vm8109_vm0, %v8110_v1 }
 0x19f   :  { %7879 = vmatpush3.bf16.msra.mxu0 %v9027_v37  ;;  %7915 = vmatpush3.bf16.msra.mxu1 %v9031_v38 }
 0x1a0   :  { %7401 = vmatprep.subr.mxu0 %v8110_v1  ;;  %7479 = vmatprep.subr.mxu1 %v8110_v1 }
 0x1a3   :  { %7402 = vmatpush3.msra.mxu0 %v9007_v32  ;;  %7480 = vmatpush3.msra.mxu1 %v9035_v39 }
 0x1a4   :  { %7404 = vmatmul.mubr.f32.vlgmr.msra.gmra.mrb[10].mxu0 %v8189_v27  ;;  %7482 = vmatmul.mubr.f32.vlgmr.msra.gmra.mrb[10].mxu1 %v8189_v27 }
 0x1b1   :  { %v2558_v0 = vpop.f32.mrb[4].mxu0  ;;  %v3063_v40 = vpop.f32.mrb[4].mxu1 }
 0x1b2   :  { %v7920_v58 = vadd.f32 %v2558_v0, %v8891_v15  ;;  %v7921_v59 = vadd.f32 %v3063_v40, %v8891_v15  ;;  %v6937_v60 = vpop.f32.mrb[5].mxu0  ;;  %v7015_v61 = vpop.f32.mrb[5].mxu1 }
 0x1b4   :  { %2563 = vst [vmem:[#allocation5 + $0x20] sm:$0xff] %v7920_v58  ;;  %3068 = vst [vmem:[#allocation5 + $0x28] sm:$0xff] %v7921_v59 }
 0x1f3   :  { %v3568_v62 = vpop.f32.mrb[6].mxu0  ;;  %v4073_v1 = vpop.f32.mrb[6].mxu1 }
 0x1f4   :  { %v7922_v63 = vadd.f32 %v3568_v62, %v8891_v15  ;;  %v7923_v2 = vadd.f32 %v4073_v1, %v8891_v15  ;;  %v7093_v3 = vpop.f32.mrb[7].mxu0  ;;  %v7171_v4 = vpop.f32.mrb[7].mxu1 }
 0x1f6   :  { %3573 = vst [vmem:[#allocation5 + $0x30] sm:$0xff] %v7922_v63  ;;  %4078 = vst [vmem:[#allocation5 + $0x38] sm:$0xff] %v7923_v2 }
 0x235   :  { %v4578_v27 = vpop.f32.mrb[8].mxu0  ;;  %v5083_v5 = vpop.f32.mrb[8].mxu1 }
 0x236   :  { %v7924_v6 = vadd.f32 %v4578_v27, %v8891_v15  ;;  %v7925_v7 = vadd.f32 %v5083_v5, %v8891_v15  ;;  %v7249_v8 = vpop.f32.mrb[9].mxu0  ;;  %v7327_v9 = vpop.f32.mrb[9].mxu1 }
 0x238   :  { %4583 = vst [vmem:[#allocation5 + $0x40] sm:$0xff] %v7924_v6  ;;  %5088 = vst [vmem:[#allocation5 + $0x48] sm:$0xff] %v7925_v7 }
 0x277   :  { %v5588_v10 = vpop.f32.mrb[10].mxu0  ;;  %v6093_v11 = vpop.f32.mrb[10].mxu1 }
 0x278   :  { %v7926_v14 = vadd.f32 %v5588_v10, %v8891_v15  ;;  %v7927_v12 = vadd.f32 %v6093_v11, %v8891_v15  ;;  %v7405_v13 = vpop.f32.mrb[11].mxu0  ;;  %v7483_v16 = vpop.f32.mrb[11].mxu1 }
 0x27a   :  { %5593 = vst [vmem:[#allocation5 + $0x50] sm:$0xff] %v7926_v14  ;;  %6098 = vst [vmem:[#allocation5 + $0x58] sm:$0xff] %v7927_v12 }
 0x27b   :  { %8090 = shalt.err (!%p8087_p12)
}
 0x27c   :  { %s8091_s5 = scalar_lea.hbm %s9180_s3, 1536 }
 0x27d   :  { %p8092_p13 = scmp.ne.s32.totalorder %s9180_s3, %s8091_s5  ;;  %p8095_p0 = scmp.lt.u32.totalorder %s8091_s5, %s9180_s3 }
 0x27f   :  { %p8097_p1 = pnand %p8095_p0, %p8092_p13 }
 0x281   :  { %8100 = shalt.err (!%p8097_p1)
}
 0x282   :  { %6110 = dma.vmem_to_hbm [thread:$0]  %s6105_s28, 1536, %s9180_s3, [#allocation4], %s8106_s22, %s8106_s22, %s8107_s23  }
 0x283   :  { %8103 = dma.done.wait [#allocation4], 1536  }
 0x284   :  { %8104 = vsyncadd [#allocation4], 4294965760 }
 0x285   :  { %6114 = vsyncpa [#allocation3], 1 }
 0x286   :  { %6115 = vsyncpa [#allocation4], 1 }

</bundles_post_ra>
